<compile_context>
chip_gen: v7x
topology: tpu7x:2x2x1
jax: 0.10.0
libtpu: 0.0.40
codegen_flags: <defaults>
</compile_context>

<pallas_src>
import math
import functools

import jax
import jax.numpy as jnp
from jax import lax
from jax.experimental import pallas as pl
from jax.experimental.pallas import tpu as pltpu

TILE_E = 2048   # edges per grid block (lane-dense; chunked in-kernel)
TILE_N = 128    # atoms per output tile (sublane axis of the one-hot)
CHUNK = 128     # edges per inner-loop chunk (one lane group)


def _edgewise_kernel(block_tile_ref, block_count_ref, center_ref, eng_ref,
                     out_ref, *, tile_n, tile_e, chunk):
    """One grid step: scatter-add one block of `tile_e` edges into the
    `tile_n`-atom output tile that owns the block (every edge of a block
    targets that tile)."""
    b = pl.program_id(0)
    tile = block_tile_ref[b]
    prev_tile = block_tile_ref[jnp.maximum(b - 1, 0)]
    # block_tile is non-decreasing, so this detects the first block of a tile.
    is_first = jnp.logical_or(b == 0, prev_tile != tile)

    @pl.when(is_first)
    def _():
        out_ref[...] = jnp.zeros_like(out_ref)

    # Skip all compute for padding-only blocks (trailing blocks, empty tiles).
    @pl.when(block_count_ref[b] > 0)
    def _():
        # Loop-invariant constants hoisted explicitly (JAX does not CSE
        # broadcast/iota if left inside the loop body).
        a_iota = lax.broadcasted_iota(jnp.int32, (tile_n, chunk), 0)
        base = tile * tile_n
        n_chunks = tile_e // chunk

        def body(c, acc):
            start = pl.multiple_of(c * chunk, chunk)
            center = center_ref[0, :, pl.ds(start, chunk)]    # (1, chunk) int32
            eng = eng_ref[0, :, pl.ds(start, chunk)]          # (1, chunk) f32
            # Padded edge slots carry center == -1 (and eng == 0): `local` is
            # negative and never matches the non-negative atom iota, so they
            # contribute exactly zero.  Do NOT change this padding convention
            # (padding center with 0 would alias atom 0).
            local = center - base                             # (1, chunk)
            w = jnp.where(a_iota == local, eng, jnp.float32(0.0))
            return acc + w                                    # (tile_n, chunk) VPU adds

        acc = lax.fori_loop(0, n_chunks, body,
                            jnp.zeros((tile_n, chunk), jnp.float32),
                            unroll=True)
        # One cross-lane reduce (XLU) per block, then accumulate into the
        # resident output tile.  Full f32 precision, no MXU involvement.
        out_ref[...] += jnp.sum(acc, axis=-1, keepdims=True)


def pack_edges(edge_index, n_atoms, tile_e=TILE_E, tile_n=TILE_N):
    """Topology-only CSR packing.  Cache and reuse the returned dict across
    calls whenever edge_index (the neighbor list) is unchanged -- the O(E log E)
    sort + scatters here dominate end-to-end cost if recomputed every step."""
    assert tile_e % CHUNK == 0 and tile_n % 8 == 0
    edge_center = jnp.asarray(edge_index)[0].astype(jnp.int32)
    n_edges = int(edge_center.shape[0])

    n_pad = max(tile_n, ((n_atoms + tile_n - 1) // tile_n) * tile_n)
    n_tiles = n_pad // tile_n

    order = jnp.argsort(edge_center)                  # sort edges by center atom
    s_center = edge_center[order]
    s_tile = s_center // tile_n                       # owning atom tile per edge

    counts = jnp.zeros((n_tiles,), jnp.int32).at[s_tile].add(1)
    blocks_per_tile = jnp.maximum(1, (counts + tile_e - 1) // tile_e)
    block_end = jnp.cumsum(blocks_per_tile).astype(jnp.int32)
    block_start = block_end - blocks_per_tile
    edge_csum = jnp.cumsum(counts).astype(jnp.int32)
    edge_start = edge_csum - counts

    # Static upper bound on #blocks: sum(max(1, ceil(c/TE))) <= E//TE + n_tiles.
    num_blocks = n_edges // tile_e + n_tiles

    block_ids = jnp.arange(num_blocks, dtype=jnp.int32)
    # Trailing (unused) blocks alias the last atom tile; they hold only padding
    # (count 0) and never re-trigger the first-block zero-init (same tile as
    # the preceding real block).
    block_tile = jnp.minimum(jnp.searchsorted(block_end, block_ids, side='right'),
                             n_tiles - 1).astype(jnp.int32)
    k_in_tile = block_ids - block_start[block_tile]
    block_count = jnp.clip(counts[block_tile] - k_in_tile * tile_e,
                           0, tile_e).astype(jnp.int32)

    rank = jnp.arange(n_edges, dtype=jnp.int32) - edge_start[s_tile]
    dest = block_start[s_tile] * tile_e + rank

    packed_center = (jnp.full((num_blocks * tile_e,), -1, jnp.int32)
                     .at[dest].set(s_center)
                     .reshape(num_blocks, 1, tile_e))

    return dict(order=order, dest=dest, block_tile=block_tile,
                block_count=block_count, packed_center=packed_center,
                num_blocks=num_blocks, n_pad=n_pad, n_tiles=n_tiles,
                tile_e=tile_e, tile_n=tile_n)


def edgewise_energy_sum(edge_index, edge_eng, atom_types,
                        per_edge_scales=None,
                        avg_num_neighbors=None,
                        normalize_edge_energy_sum=True,
                        packing=None,
                        tile_e=TILE_E, tile_n=TILE_N):
    """JAX/Pallas equivalent of allegro's EdgewiseEnergySum.forward.

    edge_index : (2, E) int
    edge_eng   : (E, 1) float ('0e' edge energies)
    atom_types : (N, 1) or (N,) int
    packing    : optional cached result of pack_edges(edge_index, N, ...)
    returns    : (N, 1) float32 per-atom energies
    """
    edge_index = jnp.asarray(edge_index).astype(jnp.int32)
    edge_eng = jnp.asarray(edge_eng, jnp.float32)
    species = jnp.asarray(atom_types).reshape(-1).astype(jnp.int32)

    n_atoms = int(species.shape[0])

    factor = 1.0
    if normalize_edge_energy_sum and avg_num_neighbors is not None:
        factor = 1.0 / math.sqrt(avg_num_neighbors)

    edge_center = edge_index[0]
    edge_neighbor = edge_index[1]

    # Per-edge species-pair scale (tiny O(E) gather) and the normalization
    # factor are folded into the edge energies here; the kernel only scatters.
    eng = edge_eng.reshape(-1)                        # '0e' -> one scalar per edge
    if per_edge_scales is not None:
        scales = jnp.asarray(per_edge_scales, jnp.float32)
        eng = eng * scales[species[edge_center], species[edge_neighbor]]
    if factor != 1.0:
        eng = eng * jnp.float32(factor)

    if packing is None:
        packing = pack_edges(edge_index, n_atoms, tile_e=tile_e, tile_n=tile_n)
    tile_e = packing["tile_e"]
    tile_n = packing["tile_n"]
    num_blocks = packing["num_blocks"]
    n_pad = packing["n_pad"]

    # Only the energy packing depends on the values; topology parts are cached.
    packed_eng = (jnp.zeros((num_blocks * tile_e,), jnp.float32)
                  .at[packing["dest"]].set(eng[packing["order"]])
                  .reshape(num_blocks, 1, tile_e))

    kernel = functools.partial(_edgewise_kernel, tile_n=tile_n, tile_e=tile_e,
                               chunk=CHUNK)

    # TODO(synk): v7x megacore - shard atom tiles across the two TensorCores
    # (leading "parallel" grid axis / core_map with per-core block lists); the
    # single "arbitrary" axis here keeps the per-tile accumulator race-free.
    out = pl.pallas_call(
        kernel,
        out_shape=jax.ShapeDtypeStruct((n_pad, 1), jnp.float32),
        grid_spec=pltpu.PrefetchScalarGridSpec(
            num_scalar_prefetch=2,
            grid=(num_blocks,),
            in_specs=[
                pl.BlockSpec((1, 1, tile_e), lambda b, bt, bc: (b, 0, 0)),  # centers
                pl.BlockSpec((1, 1, tile_e), lambda b, bt, bc: (b, 0, 0)),  # energies
            ],
            out_specs=pl.BlockSpec((tile_n, 1), lambda b, bt, bc: (bt[b], 0)),
        ),
        compiler_params=pltpu.CompilerParams(
            dimension_semantics=("arbitrary",),
            vmem_limit_bytes=32 * 1024 * 1024,
        ),
    )(packing["block_tile"], packing["block_count"],
      packing["packed_center"], packed_eng)

    return out[:n_atoms, :]


def _reference(edge_index, edge_eng, atom_types, per_edge_scales,
               avg_num_neighbors, normalize=True):
    species = jnp.asarray(atom_types).reshape(-1)
    ec, en = edge_index[0], edge_index[1]
    eng = jnp.asarray(edge_eng, jnp.float32)
    if per_edge_scales is not None:
        eng = eng * per_edge_scales[species[ec], species[en]][:, None]
    atom_eng = jax.ops.segment_sum(eng, ec, num_segments=species.shape[0])
    if normalize and avg_num_neighbors is not None:
        atom_eng = atom_eng * (1.0 / math.sqrt(avg_num_neighbors))
    return atom_eng


if __name__ == "__main__":
    key = jax.random.PRNGKey(0)
    k1, k2, k3 = jax.random.split(key, 3)

    num_atoms = 200          # -> 2 atom tiles of 128 (exercises multi-tile CSR path)
    num_edges = 1000
    num_types = 4
    avg_num_neighbors = 2.5

    edge_index = jax.random.randint(k1, (2, num_edges), 0, num_atoms, dtype=jnp.int32)
    edge_eng = jax.random.normal(k2, (num_edges, 1), dtype=jnp.float32)
    atom_types = jax.random.randint(k3, (num_atoms, 1), 0, num_types, dtype=jnp.int32)
    # parameter init in torch is ones; perturb so the scale path is exercised
    per_edge_scales = (jnp.ones((num_types, num_types), jnp.float32)
                       + 0.01 * jnp.arange(num_types * num_types, dtype=jnp.float32
                                           ).reshape(num_types, num_types))

    ref = _reference(edge_index, edge_eng, atom_types, per_edge_scales,
                     avg_num_neighbors, True)

    # Default tiling (TILE_E=2048): one block per atom tile here.
    atom_eng = jax.block_until_ready(
        edgewise_energy_sum(edge_index, edge_eng, atom_types,
                            per_edge_scales=per_edge_scales,
                            avg_num_neighbors=avg_num_neighbors,
                            normalize_edge_energy_sum=True))
    assert atom_eng.shape == (num_atoms, 1), atom_eng.shape
    assert jnp.allclose(atom_eng, ref, atol=1e-4, rtol=1e-4)

    # Small tile_e -> several blocks per atom tile: exercises the resident
    # output accumulation, first-block zero-init, and padding-block skip.
    packing_small = pack_edges(edge_index, num_atoms, tile_e=256)
    atom_eng_s = jax.block_until_ready(
        edgewise_energy_sum(edge_index, edge_eng, atom_types,
                            per_edge_scales=per_edge_scales,
                            avg_num_neighbors=avg_num_neighbors,
                            normalize_edge_energy_sum=True,
                            packing=packing_small))
    assert jnp.allclose(atom_eng_s, ref, atol=1e-4, rtol=1e-4)

    # No-scale / no-normalization path.
    atom_eng2 = jax.block_until_ready(
        edgewise_energy_sum(edge_index, edge_eng, atom_types,
                            per_edge_scales=None, avg_num_neighbors=None))
    ref2 = _reference(edge_index, edge_eng, atom_types, None, None, False)
    assert jnp.allclose(atom_eng2, ref2, atol=1e-4, rtol=1e-4)

    print("KERNEL_OK")
</pallas_src>

<mosaic_0001>
module attributes {stable_mosaic.version = 11 : i64} {
  func.func @_edgewise_kernel(%arg0: i32, %arg1: memref<2xi32, #tpu.memory_space<smem>>, %arg2: memref<2xi32, #tpu.memory_space<smem>>, %arg3: memref<1x1x2048xi32, #tpu.memory_space<vmem>>, %arg4: memref<1x1x2048xf32, #tpu.memory_space<vmem>>, %arg5: memref<128x1xf32, #tpu.memory_space<vmem>>) attributes {dimension_semantics = [#tpu.dimension_semantics<arbitrary>], iteration_bounds = array<i64: 2>, scalar_prefetch = 2 : i64, scratch_operands = 0 : i64, tpu.core_type = #tpu.core_type<tc>, window_params = [{transform_indices = @transform_0, window_bounds = array<i64: 1, 1, 2048>}, {transform_indices = @transform_1, window_bounds = array<i64: 1, 1, 2048>}, {transform_indices = @transform_2, window_bounds = array<i64: 128, 1>}]} {
    %0 = arith.index_cast %arg0 : i32 to index
    %1 = memref.load %arg1[%0] : memref<2xi32, #tpu.memory_space<smem>>
    %c1_i32 = arith.constant 1 : i32
    %2 = arith.subi %arg0, %c1_i32 : i32
    %c0_i32 = arith.constant 0 : i32
    %3 = arith.maxsi %2, %c0_i32 : i32
    %4 = arith.index_cast %3 : i32 to index
    %5 = memref.load %arg1[%4] : memref<2xi32, #tpu.memory_space<smem>>
    %c0_i32_0 = arith.constant 0 : i32
    %6 = arith.cmpi eq, %arg0, %c0_i32_0 : i32
    %7 = arith.cmpi ne, %5, %1 : i32
    %8 = arith.ori %6, %7 : i1
    %9 = arith.extui %8 : i1 to i32
    %c0_i32_1 = arith.constant 0 : i32
    %10 = arith.cmpi ne, %9, %c0_i32_1 : i32
    scf.if %10 {
      %cst = arith.constant 0.000000e+00 : f32
      %16 = vector.broadcast %cst : f32 to vector<128x1xf32>
      %c0 = arith.constant 0 : index
      %c0_4 = arith.constant 0 : index
      %17 = vector.load %arg5[%c0, %c0_4] : memref<128x1xf32, #tpu.memory_space<vmem>>, vector<128x1xf32>
      tpu.vector_store %arg5[%c0, %c0_4], %16 {strides = array<i32>} : memref<128x1xf32, #tpu.memory_space<vmem>>, vector<128x1xf32>,
    } else {
    }
    %11 = arith.index_cast %arg0 : i32 to index
    %12 = memref.load %arg2[%11] : memref<2xi32, #tpu.memory_space<smem>>
    %c0_i32_2 = arith.constant 0 : i32
    %13 = arith.cmpi sgt, %12, %c0_i32_2 : i32
    %14 = arith.extui %13 : i1 to i32
    %c0_i32_3 = arith.constant 0 : i32
    %15 = arith.cmpi ne, %14, %c0_i32_3 : i32
    scf.if %15 {
      %16 = tpu.iota {dimensions = array<i32: 0>} : vector<128x128xi32>
      %c128_i32 = arith.constant 128 : i32
      %17 = arith.muli %1, %c128_i32 : i32
      %cst = arith.constant 0.000000e+00 : f32
      %18 = vector.broadcast %cst : f32 to vector<128x128xf32>
      %c0_i32_4 = arith.constant 0 : i32
      %c128_i32_5 = arith.constant 128 : i32
      %19 = arith.muli %c0_i32_4, %c128_i32_5 : i32
      %20 = tpu.assume_multiple %19, 128 : i32
      %c0 = arith.constant 0 : index
      %c0_6 = arith.constant 0 : index
      %21 = arith.index_cast %20 : i32 to index
      %22 = vector.load %arg3[%c0, %c0_6, %21] : memref<1x1x2048xi32, #tpu.memory_space<vmem>>, vector<1x1x128xi32>
      %23 = vector.shape_cast %22 : vector<1x1x128xi32> to vector<1x128xi32>
      %c0_7 = arith.constant 0 : index
      %c0_8 = arith.constant 0 : index
      %24 = arith.index_cast %20 : i32 to index
      %25 = vector.load %arg4[%c0_7, %c0_8, %24] : memref<1x1x2048xf32, #tpu.memory_space<vmem>>, vector<1x1x128xf32>
      %26 = vector.shape_cast %25 : vector<1x1x128xf32> to vector<1x128xf32>
      %27 = vector.broadcast %17 : i32 to vector<1x128xi32>
      %28 = arith.subi %23, %27 : vector<1x128xi32>
      %29 = vector.broadcast %28 : vector<1x128xi32> to vector<128x128xi32>
      %30 = arith.cmpi eq, %16, %29 : vector<128x128xi32>
      %cst_9 = arith.constant 0.000000e+00 : f32
      %31 = vector.shape_cast %26 : vector<1x128xf32> to vector<1x128xf32>
      %32 = vector.broadcast %31 : vector<1x128xf32> to vector<128x128xf32>
      %33 = vector.broadcast %cst_9 : f32 to vector<128x128xf32>
      %34 = arith.select %30, %32, %33 : vector<128x128xi1>, vector<128x128xf32>
      %35 = arith.addf %18, %34 : vector<128x128xf32>
      %c1_i32_10 = arith.constant 1 : i32
      %c128_i32_11 = arith.constant 128 : i32
      %36 = arith.muli %c1_i32_10, %c128_i32_11 : i32
      %37 = tpu.assume_multiple %36, 128 : i32
      %c0_12 = arith.constant 0 : index
      %c0_13 = arith.constant 0 : index
      %38 = arith.index_cast %37 : i32 to index
      %39 = vector.load %arg3[%c0_12, %c0_13, %38] : memref<1x1x2048xi32, #tpu.memory_space<vmem>>, vector<1x1x128xi32>
      %40 = vector.shape_cast %39 : vector<1x1x128xi32> to vector<1x128xi32>
      %c0_14 = arith.constant 0 : index
      %c0_15 = arith.constant 0 : index
      %41 = arith.index_cast %37 : i32 to index
      %42 = vector.load %arg4[%c0_14, %c0_15, %41] : memref<1x1x2048xf32, #tpu.memory_space<vmem>>, vector<1x1x128xf32>
      %43 = vector.shape_cast %42 : vector<1x1x128xf32> to vector<1x128xf32>
      %44 = vector.broadcast %17 : i32 to vector<1x128xi32>
      %45 = arith.subi %40, %44 : vector<1x128xi32>
      %46 = vector.broadcast %45 : vector<1x128xi32> to vector<128x128xi32>
      %47 = arith.cmpi eq, %16, %46 : vector<128x128xi32>
      %cst_16 = arith.constant 0.000000e+00 : f32
      %48 = vector.shape_cast %43 : vector<1x128xf32> to vector<1x128xf32>
      %49 = vector.broadcast %48 : vector<1x128xf32> to vector<128x128xf32>
      %50 = vector.broadcast %cst_16 : f32 to vector<128x128xf32>
      %51 = arith.select %47, %49, %50 : vector<128x128xi1>, vector<128x128xf32>
      %52 = arith.addf %35, %51 : vector<128x128xf32>
      %c2_i32 = arith.constant 2 : i32
      %c128_i32_17 = arith.constant 128 : i32
      %53 = arith.muli %c2_i32, %c128_i32_17 : i32
      %54 = tpu.assume_multiple %53, 128 : i32
      %c0_18 = arith.constant 0 : index
      %c0_19 = arith.constant 0 : index
      %55 = arith.index_cast %54 : i32 to index
      %56 = vector.load %arg3[%c0_18, %c0_19, %55] : memref<1x1x2048xi32, #tpu.memory_space<vmem>>, vector<1x1x128xi32>
      %57 = vector.shape_cast %56 : vector<1x1x128xi32> to vector<1x128xi32>
      %c0_20 = arith.constant 0 : index
      %c0_21 = arith.constant 0 : index
      %58 = arith.index_cast %54 : i32 to index
      %59 = vector.load %arg4[%c0_20, %c0_21, %58] : memref<1x1x2048xf32, #tpu.memory_space<vmem>>, vector<1x1x128xf32>
      %60 = vector.shape_cast %59 : vector<1x1x128xf32> to vector<1x128xf32>
      %61 = vector.broadcast %17 : i32 to vector<1x128xi32>
      %62 = arith.subi %57, %61 : vector<1x128xi32>
      %63 = vector.broadcast %62 : vector<1x128xi32> to vector<128x128xi32>
      %64 = arith.cmpi eq, %16, %63 : vector<128x128xi32>
      %cst_22 = arith.constant 0.000000e+00 : f32
      %65 = vector.shape_cast %60 : vector<1x128xf32> to vector<1x128xf32>
      %66 = vector.broadcast %65 : vector<1x128xf32> to vector<128x128xf32>
      %67 = vector.broadcast %cst_22 : f32 to vector<128x128xf32>
      %68 = arith.select %64, %66, %67 : vector<128x128xi1>, vector<128x128xf32>
      %69 = arith.addf %52, %68 : vector<128x128xf32>
      %c3_i32 = arith.constant 3 : i32
      %c128_i32_23 = arith.constant 128 : i32
      %70 = arith.muli %c3_i32, %c128_i32_23 : i32
      %71 = tpu.assume_multiple %70, 128 : i32
      %c0_24 = arith.constant 0 : index
      %c0_25 = arith.constant 0 : index
      %72 = arith.index_cast %71 : i32 to index
      %73 = vector.load %arg3[%c0_24, %c0_25, %72] : memref<1x1x2048xi32, #tpu.memory_space<vmem>>, vector<1x1x128xi32>
      %74 = vector.shape_cast %73 : vector<1x1x128xi32> to vector<1x128xi32>
      %c0_26 = arith.constant 0 : index
      %c0_27 = arith.constant 0 : index
      %75 = arith.index_cast %71 : i32 to index
      %76 = vector.load %arg4[%c0_26, %c0_27, %75] : memref<1x1x2048xf32, #tpu.memory_space<vmem>>, vector<1x1x128xf32>
      %77 = vector.shape_cast %76 : vector<1x1x128xf32> to vector<1x128xf32>
      %78 = vector.broadcast %17 : i32 to vector<1x128xi32>
      %79 = arith.subi %74, %78 : vector<1x128xi32>
      %80 = vector.broadcast %79 : vector<1x128xi32> to vector<128x128xi32>
      %81 = arith.cmpi eq, %16, %80 : vector<128x128xi32>
      %cst_28 = arith.constant 0.000000e+00 : f32
      %82 = vector.shape_cast %77 : vector<1x128xf32> to vector<1x128xf32>
      %83 = vector.broadcast %82 : vector<1x128xf32> to vector<128x128xf32>
      %84 = vector.broadcast %cst_28 : f32 to vector<128x128xf32>
      %85 = arith.select %81, %83, %84 : vector<128x128xi1>, vector<128x128xf32>
      %86 = arith.addf %69, %85 : vector<128x128xf32>
      %c4_i32 = arith.constant 4 : i32
      %c128_i32_29 = arith.constant 128 : i32
      %87 = arith.muli %c4_i32, %c128_i32_29 : i32
      %88 = tpu.assume_multiple %87, 128 : i32
      %c0_30 = arith.constant 0 : index
      %c0_31 = arith.constant 0 : index
      %89 = arith.index_cast %88 : i32 to index
      %90 = vector.load %arg3[%c0_30, %c0_31, %89] : memref<1x1x2048xi32, #tpu.memory_space<vmem>>, vector<1x1x128xi32>
      %91 = vector.shape_cast %90 : vector<1x1x128xi32> to vector<1x128xi32>
      %c0_32 = arith.constant 0 : index
      %c0_33 = arith.constant 0 : index
      %92 = arith.index_cast %88 : i32 to index
      %93 = vector.load %arg4[%c0_32, %c0_33, %92] : memref<1x1x2048xf32, #tpu.memory_space<vmem>>, vector<1x1x128xf32>
      %94 = vector.shape_cast %93 : vector<1x1x128xf32> to vector<1x128xf32>
      %95 = vector.broadcast %17 : i32 to vector<1x128xi32>
      %96 = arith.subi %91, %95 : vector<1x128xi32>
      %97 = vector.broadcast %96 : vector<1x128xi32> to vector<128x128xi32>
      %98 = arith.cmpi eq, %16, %97 : vector<128x128xi32>
      %cst_34 = arith.constant 0.000000e+00 : f32
      %99 = vector.shape_cast %94 : vector<1x128xf32> to vector<1x128xf32>
      %100 = vector.broadcast %99 : vector<1x128xf32> to vector<128x128xf32>
      %101 = vector.broadcast %cst_34 : f32 to vector<128x128xf32>
      %102 = arith.select %98, %100, %101 : vector<128x128xi1>, vector<128x128xf32>
      %103 = arith.addf %86, %102 : vector<128x128xf32>
      %c5_i32 = arith.constant 5 : i32
      %c128_i32_35 = arith.constant 128 : i32
      %104 = arith.muli %c5_i32, %c128_i32_35 : i32
      %105 = tpu.assume_multiple %104, 128 : i32
      %c0_36 = arith.constant 0 : index
      %c0_37 = arith.constant 0 : index
      %106 = arith.index_cast %105 : i32 to index
      %107 = vector.load %arg3[%c0_36, %c0_37, %106] : memref<1x1x2048xi32, #tpu.memory_space<vmem>>, vector<1x1x128xi32>
      %108 = vector.shape_cast %107 : vector<1x1x128xi32> to vector<1x128xi32>
      %c0_38 = arith.constant 0 : index
      %c0_39 = arith.constant 0 : index
      %109 = arith.index_cast %105 : i32 to index
      %110 = vector.load %arg4[%c0_38, %c0_39, %109] : memref<1x1x2048xf32, #tpu.memory_space<vmem>>, vector<1x1x128xf32>
      %111 = vector.shape_cast %110 : vector<1x1x128xf32> to vector<1x128xf32>
      %112 = vector.broadcast %17 : i32 to vector<1x128xi32>
      %113 = arith.subi %108, %112 : vector<1x128xi32>
      %114 = vector.broadcast %113 : vector<1x128xi32> to vector<128x128xi32>
      %115 = arith.cmpi eq, %16, %114 : vector<128x128xi32>
      %cst_40 = arith.constant 0.000000e+00 : f32
      %116 = vector.shape_cast %111 : vector<1x128xf32> to vector<1x128xf32>
      %117 = vector.broadcast %116 : vector<1x128xf32> to vector<128x128xf32>
      %118 = vector.broadcast %cst_40 : f32 to vector<128x128xf32>
      %119 = arith.select %115, %117, %118 : vector<128x128xi1>, vector<128x128xf32>
      %120 = arith.addf %103, %119 : vector<128x128xf32>
      %c6_i32 = arith.constant 6 : i32
      %c128_i32_41 = arith.constant 128 : i32
      %121 = arith.muli %c6_i32, %c128_i32_41 : i32
      %122 = tpu.assume_multiple %121, 128 : i32
      %c0_42 = arith.constant 0 : index
      %c0_43 = arith.constant 0 : index
      %123 = arith.index_cast %122 : i32 to index
      %124 = vector.load %arg3[%c0_42, %c0_43, %123] : memref<1x1x2048xi32, #tpu.memory_space<vmem>>, vector<1x1x128xi32>
      %125 = vector.shape_cast %124 : vector<1x1x128xi32> to vector<1x128xi32>
      %c0_44 = arith.constant 0 : index
      %c0_45 = arith.constant 0 : index
      %126 = arith.index_cast %122 : i32 to index
      %127 = vector.load %arg4[%c0_44, %c0_45, %126] : memref<1x1x2048xf32, #tpu.memory_space<vmem>>, vector<1x1x128xf32>
      %128 = vector.shape_cast %127 : vector<1x1x128xf32> to vector<1x128xf32>
      %129 = vector.broadcast %17 : i32 to vector<1x128xi32>
      %130 = arith.subi %125, %129 : vector<1x128xi32>
      %131 = vector.broadcast %130 : vector<1x128xi32> to vector<128x128xi32>
      %132 = arith.cmpi eq, %16, %131 : vector<128x128xi32>
      %cst_46 = arith.constant 0.000000e+00 : f32
      %133 = vector.shape_cast %128 : vector<1x128xf32> to vector<1x128xf32>
      %134 = vector.broadcast %133 : vector<1x128xf32> to vector<128x128xf32>
      %135 = vector.broadcast %cst_46 : f32 to vector<128x128xf32>
      %136 = arith.select %132, %134, %135 : vector<128x128xi1>, vector<128x128xf32>
      %137 = arith.addf %120, %136 : vector<128x128xf32>
      %c7_i32 = arith.constant 7 : i32
      %c128_i32_47 = arith.constant 128 : i32
      %138 = arith.muli %c7_i32, %c128_i32_47 : i32
      %139 = tpu.assume_multiple %138, 128 : i32
      %c0_48 = arith.constant 0 : index
      %c0_49 = arith.constant 0 : index
      %140 = arith.index_cast %139 : i32 to index
      %141 = vector.load %arg3[%c0_48, %c0_49, %140] : memref<1x1x2048xi32, #tpu.memory_space<vmem>>, vector<1x1x128xi32>
      %142 = vector.shape_cast %141 : vector<1x1x128xi32> to vector<1x128xi32>
      %c0_50 = arith.constant 0 : index
      %c0_51 = arith.constant 0 : index
      %143 = arith.index_cast %139 : i32 to index
      %144 = vector.load %arg4[%c0_50, %c0_51, %143] : memref<1x1x2048xf32, #tpu.memory_space<vmem>>, vector<1x1x128xf32>
      %145 = vector.shape_cast %144 : vector<1x1x128xf32> to vector<1x128xf32>
      %146 = vector.broadcast %17 : i32 to vector<1x128xi32>
      %147 = arith.subi %142, %146 : vector<1x128xi32>
      %148 = vector.broadcast %147 : vector<1x128xi32> to vector<128x128xi32>
      %149 = arith.cmpi eq, %16, %148 : vector<128x128xi32>
      %cst_52 = arith.constant 0.000000e+00 : f32
      %150 = vector.shape_cast %145 : vector<1x128xf32> to vector<1x128xf32>
      %151 = vector.broadcast %150 : vector<1x128xf32> to vector<128x128xf32>
      %152 = vector.broadcast %cst_52 : f32 to vector<128x128xf32>
      %153 = arith.select %149, %151, %152 : vector<128x128xi1>, vector<128x128xf32>
      %154 = arith.addf %137, %153 : vector<128x128xf32>
      %c8_i32 = arith.constant 8 : i32
      %c128_i32_53 = arith.constant 128 : i32
      %155 = arith.muli %c8_i32, %c128_i32_53 : i32
      %156 = tpu.assume_multiple %155, 128 : i32
      %c0_54 = arith.constant 0 : index
      %c0_55 = arith.constant 0 : index
      %157 = arith.index_cast %156 : i32 to index
      %158 = vector.load %arg3[%c0_54, %c0_55, %157] : memref<1x1x2048xi32, #tpu.memory_space<vmem>>, vector<1x1x128xi32>
      %159 = vector.shape_cast %158 : vector<1x1x128xi32> to vector<1x128xi32>
      %c0_56 = arith.constant 0 : index
      %c0_57 = arith.constant 0 : index
      %160 = arith.index_cast %156 : i32 to index
      %161 = vector.load %arg4[%c0_56, %c0_57, %160] : memref<1x1x2048xf32, #tpu.memory_space<vmem>>, vector<1x1x128xf32>
      %162 = vector.shape_cast %161 : vector<1x1x128xf32> to vector<1x128xf32>
      %163 = vector.broadcast %17 : i32 to vector<1x128xi32>
      %164 = arith.subi %159, %163 : vector<1x128xi32>
      %165 = vector.broadcast %164 : vector<1x128xi32> to vector<128x128xi32>
      %166 = arith.cmpi eq, %16, %165 : vector<128x128xi32>
      %cst_58 = arith.constant 0.000000e+00 : f32
      %167 = vector.shape_cast %162 : vector<1x128xf32> to vector<1x128xf32>
      %168 = vector.broadcast %167 : vector<1x128xf32> to vector<128x128xf32>
      %169 = vector.broadcast %cst_58 : f32 to vector<128x128xf32>
      %170 = arith.select %166, %168, %169 : vector<128x128xi1>, vector<128x128xf32>
      %171 = arith.addf %154, %170 : vector<128x128xf32>
      %c9_i32 = arith.constant 9 : i32
      %c128_i32_59 = arith.constant 128 : i32
      %172 = arith.muli %c9_i32, %c128_i32_59 : i32
      %173 = tpu.assume_multiple %172, 128 : i32
      %c0_60 = arith.constant 0 : index
      %c0_61 = arith.constant 0 : index
      %174 = arith.index_cast %173 : i32 to index
      %175 = vector.load %arg3[%c0_60, %c0_61, %174] : memref<1x1x2048xi32, #tpu.memory_space<vmem>>, vector<1x1x128xi32>
      %176 = vector.shape_cast %175 : vector<1x1x128xi32> to vector<1x128xi32>
      %c0_62 = arith.constant 0 : index
      %c0_63 = arith.constant 0 : index
      %177 = arith.index_cast %173 : i32 to index
      %178 = vector.load %arg4[%c0_62, %c0_63, %177] : memref<1x1x2048xf32, #tpu.memory_space<vmem>>, vector<1x1x128xf32>
      %179 = vector.shape_cast %178 : vector<1x1x128xf32> to vector<1x128xf32>
      %180 = vector.broadcast %17 : i32 to vector<1x128xi32>
      %181 = arith.subi %176, %180 : vector<1x128xi32>
      %182 = vector.broadcast %181 : vector<1x128xi32> to vector<128x128xi32>
      %183 = arith.cmpi eq, %16, %182 : vector<128x128xi32>
      %cst_64 = arith.constant 0.000000e+00 : f32
      %184 = vector.shape_cast %179 : vector<1x128xf32> to vector<1x128xf32>
      %185 = vector.broadcast %184 : vector<1x128xf32> to vector<128x128xf32>
      %186 = vector.broadcast %cst_64 : f32 to vector<128x128xf32>
      %187 = arith.select %183, %185, %186 : vector<128x128xi1>, vector<128x128xf32>
      %188 = arith.addf %171, %187 : vector<128x128xf32>
      %c10_i32 = arith.constant 10 : i32
      %c128_i32_65 = arith.constant 128 : i32
      %189 = arith.muli %c10_i32, %c128_i32_65 : i32
      %190 = tpu.assume_multiple %189, 128 : i32
      %c0_66 = arith.constant 0 : index
      %c0_67 = arith.constant 0 : index
      %191 = arith.index_cast %190 : i32 to index
      %192 = vector.load %arg3[%c0_66, %c0_67, %191] : memref<1x1x2048xi32, #tpu.memory_space<vmem>>, vector<1x1x128xi32>
      %193 = vector.shape_cast %192 : vector<1x1x128xi32> to vector<1x128xi32>
      %c0_68 = arith.constant 0 : index
      %c0_69 = arith.constant 0 : index
      %194 = arith.index_cast %190 : i32 to index
      %195 = vector.load %arg4[%c0_68, %c0_69, %194] : memref<1x1x2048xf32, #tpu.memory_space<vmem>>, vector<1x1x128xf32>
      %196 = vector.shape_cast %195 : vector<1x1x128xf32> to vector<1x128xf32>
      %197 = vector.broadcast %17 : i32 to vector<1x128xi32>
      %198 = arith.subi %193, %197 : vector<1x128xi32>
      %199 = vector.broadcast %198 : vector<1x128xi32> to vector<128x128xi32>
      %200 = arith.cmpi eq, %16, %199 : vector<128x128xi32>
      %cst_70 = arith.constant 0.000000e+00 : f32
      %201 = vector.shape_cast %196 : vector<1x128xf32> to vector<1x128xf32>
      %202 = vector.broadcast %201 : vector<1x128xf32> to vector<128x128xf32>
      %203 = vector.broadcast %cst_70 : f32 to vector<128x128xf32>
      %204 = arith.select %200, %202, %203 : vector<128x128xi1>, vector<128x128xf32>
      %205 = arith.addf %188, %204 : vector<128x128xf32>
      %c11_i32 = arith.constant 11 : i32
      %c128_i32_71 = arith.constant 128 : i32
      %206 = arith.muli %c11_i32, %c128_i32_71 : i32
      %207 = tpu.assume_multiple %206, 128 : i32
      %c0_72 = arith.constant 0 : index
      %c0_73 = arith.constant 0 : index
      %208 = arith.index_cast %207 : i32 to index
      %209 = vector.load %arg3[%c0_72, %c0_73, %208] : memref<1x1x2048xi32, #tpu.memory_space<vmem>>, vector<1x1x128xi32>
      %210 = vector.shape_cast %209 : vector<1x1x128xi32> to vector<1x128xi32>
      %c0_74 = arith.constant 0 : index
      %c0_75 = arith.constant 0 : index
      %211 = arith.index_cast %207 : i32 to index
      %212 = vector.load %arg4[%c0_74, %c0_75, %211] : memref<1x1x2048xf32, #tpu.memory_space<vmem>>, vector<1x1x128xf32>
      %213 = vector.shape_cast %212 : vector<1x1x128xf32> to vector<1x128xf32>
      %214 = vector.broadcast %17 : i32 to vector<1x128xi32>
      %215 = arith.subi %210, %214 : vector<1x128xi32>
      %216 = vector.broadcast %215 : vector<1x128xi32> to vector<128x128xi32>
      %217 = arith.cmpi eq, %16, %216 : vector<128x128xi32>
      %cst_76 = arith.constant 0.000000e+00 : f32
      %218 = vector.shape_cast %213 : vector<1x128xf32> to vector<1x128xf32>
      %219 = vector.broadcast %218 : vector<1x128xf32> to vector<128x128xf32>
      %220 = vector.broadcast %cst_76 : f32 to vector<128x128xf32>
      %221 = arith.select %217, %219, %220 : vector<128x128xi1>, vector<128x128xf32>
      %222 = arith.addf %205, %221 : vector<128x128xf32>
      %c12_i32 = arith.constant 12 : i32
      %c128_i32_77 = arith.constant 128 : i32
      %223 = arith.muli %c12_i32, %c128_i32_77 : i32
      %224 = tpu.assume_multiple %223, 128 : i32
      %c0_78 = arith.constant 0 : index
      %c0_79 = arith.constant 0 : index
      %225 = arith.index_cast %224 : i32 to index
      %226 = vector.load %arg3[%c0_78, %c0_79, %225] : memref<1x1x2048xi32, #tpu.memory_space<vmem>>, vector<1x1x128xi32>
      %227 = vector.shape_cast %226 : vector<1x1x128xi32> to vector<1x128xi32>
      %c0_80 = arith.constant 0 : index
      %c0_81 = arith.constant 0 : index
      %228 = arith.index_cast %224 : i32 to index
      %229 = vector.load %arg4[%c0_80, %c0_81, %228] : memref<1x1x2048xf32, #tpu.memory_space<vmem>>, vector<1x1x128xf32>
      %230 = vector.shape_cast %229 : vector<1x1x128xf32> to vector<1x128xf32>
      %231 = vector.broadcast %17 : i32 to vector<1x128xi32>
      %232 = arith.subi %227, %231 : vector<1x128xi32>
      %233 = vector.broadcast %232 : vector<1x128xi32> to vector<128x128xi32>
      %234 = arith.cmpi eq, %16, %233 : vector<128x128xi32>
      %cst_82 = arith.constant 0.000000e+00 : f32
      %235 = vector.shape_cast %230 : vector<1x128xf32> to vector<1x128xf32>
      %236 = vector.broadcast %235 : vector<1x128xf32> to vector<128x128xf32>
      %237 = vector.broadcast %cst_82 : f32 to vector<128x128xf32>
      %238 = arith.select %234, %236, %237 : vector<128x128xi1>, vector<128x128xf32>
      %239 = arith.addf %222, %238 : vector<128x128xf32>
      %c13_i32 = arith.constant 13 : i32
      %c128_i32_83 = arith.constant 128 : i32
      %240 = arith.muli %c13_i32, %c128_i32_83 : i32
      %241 = tpu.assume_multiple %240, 128 : i32
      %c0_84 = arith.constant 0 : index
      %c0_85 = arith.constant 0 : index
      %242 = arith.index_cast %241 : i32 to index
      %243 = vector.load %arg3[%c0_84, %c0_85, %242] : memref<1x1x2048xi32, #tpu.memory_space<vmem>>, vector<1x1x128xi32>
      %244 = vector.shape_cast %243 : vector<1x1x128xi32> to vector<1x128xi32>
      %c0_86 = arith.constant 0 : index
      %c0_87 = arith.constant 0 : index
      %245 = arith.index_cast %241 : i32 to index
      %246 = vector.load %arg4[%c0_86, %c0_87, %245] : memref<1x1x2048xf32, #tpu.memory_space<vmem>>, vector<1x1x128xf32>
      %247 = vector.shape_cast %246 : vector<1x1x128xf32> to vector<1x128xf32>
      %248 = vector.broadcast %17 : i32 to vector<1x128xi32>
      %249 = arith.subi %244, %248 : vector<1x128xi32>
      %250 = vector.broadcast %249 : vector<1x128xi32> to vector<128x128xi32>
      %251 = arith.cmpi eq, %16, %250 : vector<128x128xi32>
      %cst_88 = arith.constant 0.000000e+00 : f32
      %252 = vector.shape_cast %247 : vector<1x128xf32> to vector<1x128xf32>
      %253 = vector.broadcast %252 : vector<1x128xf32> to vector<128x128xf32>
      %254 = vector.broadcast %cst_88 : f32 to vector<128x128xf32>
      %255 = arith.select %251, %253, %254 : vector<128x128xi1>, vector<128x128xf32>
      %256 = arith.addf %239, %255 : vector<128x128xf32>
      %c14_i32 = arith.constant 14 : i32
      %c128_i32_89 = arith.constant 128 : i32
      %257 = arith.muli %c14_i32, %c128_i32_89 : i32
      %258 = tpu.assume_multiple %257, 128 : i32
      %c0_90 = arith.constant 0 : index
      %c0_91 = arith.constant 0 : index
      %259 = arith.index_cast %258 : i32 to index
      %260 = vector.load %arg3[%c0_90, %c0_91, %259] : memref<1x1x2048xi32, #tpu.memory_space<vmem>>, vector<1x1x128xi32>
      %261 = vector.shape_cast %260 : vector<1x1x128xi32> to vector<1x128xi32>
      %c0_92 = arith.constant 0 : index
      %c0_93 = arith.constant 0 : index
      %262 = arith.index_cast %258 : i32 to index
      %263 = vector.load %arg4[%c0_92, %c0_93, %262] : memref<1x1x2048xf32, #tpu.memory_space<vmem>>, vector<1x1x128xf32>
      %264 = vector.shape_cast %263 : vector<1x1x128xf32> to vector<1x128xf32>
      %265 = vector.broadcast %17 : i32 to vector<1x128xi32>
      %266 = arith.subi %261, %265 : vector<1x128xi32>
      %267 = vector.broadcast %266 : vector<1x128xi32> to vector<128x128xi32>
      %268 = arith.cmpi eq, %16, %267 : vector<128x128xi32>
      %cst_94 = arith.constant 0.000000e+00 : f32
      %269 = vector.shape_cast %264 : vector<1x128xf32> to vector<1x128xf32>
      %270 = vector.broadcast %269 : vector<1x128xf32> to vector<128x128xf32>
      %271 = vector.broadcast %cst_94 : f32 to vector<128x128xf32>
      %272 = arith.select %268, %270, %271 : vector<128x128xi1>, vector<128x128xf32>
      %273 = arith.addf %256, %272 : vector<128x128xf32>
      %c15_i32 = arith.constant 15 : i32
      %c128_i32_95 = arith.constant 128 : i32
      %274 = arith.muli %c15_i32, %c128_i32_95 : i32
      %275 = tpu.assume_multiple %274, 128 : i32
      %c0_96 = arith.constant 0 : index
      %c0_97 = arith.constant 0 : index
      %276 = arith.index_cast %275 : i32 to index
      %277 = vector.load %arg3[%c0_96, %c0_97, %276] : memref<1x1x2048xi32, #tpu.memory_space<vmem>>, vector<1x1x128xi32>
      %278 = vector.shape_cast %277 : vector<1x1x128xi32> to vector<1x128xi32>
      %c0_98 = arith.constant 0 : index
      %c0_99 = arith.constant 0 : index
      %279 = arith.index_cast %275 : i32 to index
      %280 = vector.load %arg4[%c0_98, %c0_99, %279] : memref<1x1x2048xf32, #tpu.memory_space<vmem>>, vector<1x1x128xf32>
      %281 = vector.shape_cast %280 : vector<1x1x128xf32> to vector<1x128xf32>
      %282 = vector.broadcast %17 : i32 to vector<1x128xi32>
      %283 = arith.subi %278, %282 : vector<1x128xi32>
      %284 = vector.broadcast %283 : vector<1x128xi32> to vector<128x128xi32>
      %285 = arith.cmpi eq, %16, %284 : vector<128x128xi32>
      %cst_100 = arith.constant 0.000000e+00 : f32
      %286 = vector.shape_cast %281 : vector<1x128xf32> to vector<1x128xf32>
      %287 = vector.broadcast %286 : vector<1x128xf32> to vector<128x128xf32>
      %288 = vector.broadcast %cst_100 : f32 to vector<128x128xf32>
      %289 = arith.select %285, %287, %288 : vector<128x128xi1>, vector<128x128xf32>
      %290 = arith.addf %273, %289 : vector<128x128xf32>
      %c16_i32 = arith.constant 16 : i32
      %c0_101 = arith.constant 0 : index
      %c0_102 = arith.constant 0 : index
      %291 = vector.load %arg5[%c0_101, %c0_102] : memref<128x1xf32, #tpu.memory_space<vmem>>, vector<128x1xf32>
      %cst_103 = arith.constant dense<0.000000e+00> : vector<128xf32>
      %292 = vector.multi_reduction <add>, %290, %cst_103 [1] : vector<128x128xf32> to vector<128xf32>
      %293 = vector.shape_cast %292 : vector<128xf32> to vector<128x1xf32>
      %294 = arith.addf %291, %293 : vector<128x1xf32>
      %c0_104 = arith.constant 0 : index
      %c0_105 = arith.constant 0 : index
      %295 = vector.load %arg5[%c0_104, %c0_105] : memref<128x1xf32, #tpu.memory_space<vmem>>, vector<128x1xf32>
      tpu.vector_store %arg5[%c0_104, %c0_105], %294 {strides = array<i32>} : memref<128x1xf32, #tpu.memory_space<vmem>>, vector<128x1xf32>,
    } else {
    }
    return
  }
  func.func @transform_0(%arg0: i32, %arg1: memref<2xi32, #tpu.memory_space<smem>>, %arg2: memref<2xi32, #tpu.memory_space<smem>>) -> (i32, i32, i32) {
    %c0_i32 = arith.constant 0 : i32
    %c0_i32_0 = arith.constant 0 : i32
    %c0_i32_1 = arith.constant 0 : i32
    return %arg0, %c0_i32, %c0_i32_0 : i32, i32, i32
  }
  func.func @transform_1(%arg0: i32, %arg1: memref<2xi32, #tpu.memory_space<smem>>, %arg2: memref<2xi32, #tpu.memory_space<smem>>) -> (i32, i32, i32) {
    %c0_i32 = arith.constant 0 : i32
    %c0_i32_0 = arith.constant 0 : i32
    %c0_i32_1 = arith.constant 0 : i32
    return %arg0, %c0_i32, %c0_i32_0 : i32, i32, i32
  }
  func.func @transform_2(%arg0: i32, %arg1: memref<2xi32, #tpu.memory_space<smem>>, %arg2: memref<2xi32, #tpu.memory_space<smem>>) -> (i32, i32) {
    %0 = arith.index_cast %arg0 : i32 to index
    %1 = memref.load %arg1[%0] : memref<2xi32, #tpu.memory_space<smem>>
    %c0_i32 = arith.constant 0 : i32
    %c0_i32_0 = arith.constant 0 : i32
    return %1, %c0_i32 : i32, i32
  }
}

</mosaic_0001>

<bundles_post_ra>
// kernel: tpu_custom_call.1
= control target key start
LH: loop header
LB: loop body
LE: loop exit
PB: predicated region body
PF: predicated region fallthrough
CT: control target
= control target key end

     0   :  { %s3162_s0 = inlined_call_operand.hbm [shape: s32[2], index: 0, kind: input, shape index: {}]   ;;  %s3163_s2 = inlined_call_operand.hbm [shape: s32[2,1,2048], index: 2, kind: input, shape index: {}]   ;;  %s3164_s3 = inlined_call_operand.hbm [shape: f32[2,1,2048], index: 3, kind: input, shape index: {}]   ;;  %s3165_s4 = inlined_call_operand.vmem [shape: f32[256,1], index: 4, kind: output, shape index: {}]   ;;  %s3166_s1 = inlined_call_operand.vmem [shape: s32[2], index: 1, kind: input, shape index: {}]  }
   0x1   :  { %s1579_s17 = scalar_lea.hbm %s3162_s0, 16 }
   0x2   :  { %p1580_p0 = scmp.ne.s32.totalorder %s3162_s0, %s1579_s17  ;;  %p1583_p1 = scmp.lt.u32.totalorder %s1579_s17, %s3162_s0 }
   0x4   :  { %p1585_p2 = pnand %p1583_p1, %p1580_p0 }
   0x6   :  { %1588 = shalt.err (!%p1585_p2)  }
   0x7   :  { %s1703_s22 = smov [#allocation3]   ;;  %s11_s27 = sshll.u32 %s3166_s1, 4  ;;  %s12_s27 = int_to_ptr.vmem [resolvable:$true] %s11_s27 }
   0x8   :  { %10 = dma.hbm_to_smem %s3162_s0, 16, %s1703_s22, [#allocation2] }
   0x9   :  { %s1589_s28 = scalar_lea.vmem %s12_s27, 16  ;;  %p1594_p4 = scmp.lt.s32.totalorder %s12_s27, %s12_s27 }
   0xa   :  { %p1590_p3 = scmp.ne.s32.totalorder %s12_s27, %s1589_s28  ;;  %p1595_p5 = scmp.lt.s32.totalorder %s1589_s28, %s1589_s28 }
   0xc   :  { %p1596_p6 = por %p1595_p5, %p1594_p4 }
   0xe   :  { %p1597_p7 = pnand %p1596_p6, %p1590_p3 }
  0x10   :  { %1600 = shalt.err (!%p1597_p7)  }
  0x11   :  { %s1704_s29 = smov [#allocation4]  }
  0x12   :  { %14 = dma.vmem_to_smem %s12_s27, 16, %s1704_s29, [#allocation2] }
  0x13   :  { %1677 = dma.done.wait [#allocation2], 32 }
  0x14   :  { %1678 = vsyncadd [#allocation2], 4294967264 }
  0x15   :  { %16 = sfence }
  0x16   :  { %17 = vsyncpa [#allocation6], 0 }
  0x17   :  { %19 = vsyncpa [#allocation6 + $0x1], 0 }
  0x18   :  { %20 = vsyncpa [#allocation8], 0 }
  0x19   :  { %22 = vsyncpa [#allocation8 + $0x1], 0  ;;  %s1748_s0 = smov 0   ;;  %s1750_s1 = smov 0  }
  0x1a   :  { %s1752_s30 = smov 0   ;;  %s1754_s5 = smov 0  }
  0x1b LB: > { %s1767_s6 = sadd.s32 4294967295, %s1701_s5   ;;  %s1770_s7 = sadd.s32 1, %s1701_s5   ;;  %s1701_s5 = sphi %s1754_s5, %s3180_s5   ;;  %s1697_s30 = sphi %s1752_s30, %s3179_s30   ;;  %s1693_s1 = sphi %s1750_s1, %s3178_s1   ;;  %s1689_s0 = sphi %s1748_s0, %s3177_s0  }
  0x1c   : > { %s32_s8 = ssub.s32 %s1701_s5, %s1770_s7  ;;  %s35_s9 = sadd.s32 1, %s1697_s30 }
  0x1d   : > { %p33_p8 = scmp.eq.s32.totalorder %s32_s8, 0  ;;  %p42_p9 = scmp.ne.s32.totalorder %s1697_s30, %s1693_s1 }
  0x1e   : > { %p43_p10 = scmp.eq.s32.totalorder %s1701_s5, 0  ;;  %p48_p11 = scmp.ne.s32.totalorder %s1693_s1, %s1689_s0 }
  0x1f   : > { %s1780_s10 = scalar_select %p33_p8, %s1697_s30, %s35_s9  }
  0x20   : > { %p44_p12 = por %p43_p10, %p42_p9  ;;  %p3167_p13 = scmp.eq.s32.totalorder %s1767_s6, 0 }
  0x21   : > { %p1527_p0 = scmp.lt.s32.totalorder %s1701_s5, 2  ;;  %s1791_s12 = sand.u32 1, %s1697_s30  }
  0x22   : > { %p1786_p1 = por %p3167_p13, %p48_p11  ;;  %s1452_s13 = sshll.u32 %s1791_s12, 4 }
  0x23   : > { %s1514_s14 = sshll.u32 %s1701_s5, 8  ;;  %s130_s18 = scalar_lea.vmem [#allocation5], %s1452_s13 }
  0x24   : > { %s3169_s11 = scalar_select %p1786_p1, 1, 0 }
  0x25   : > { %s1800_s17 = scalar_lea.hbm %s3163_s2, %s1514_s14  ;;  %s138_s19 = sshll.u32 %s130_s18, 4  ;;  %s1804_s19 = int_to_ptr.vmem [resolvable:$true] %s138_s19 }
  0x26   : > { %p1806_p2 = pnand %p1527_p0, %p44_p12  ;;  %s127_s21 = scalar_lea.sflag [#allocation6], %s1791_s12 }
  0x27   : > { %s1601_s22 = scalar_lea.hbm %s1800_s17, 256  ;;  %s1606_s25 = scalar_lea.hbm %s3163_s2, 512 }
  0x28   : > { %p1602_p5 = scmp.ne.s32.totalorder %s1800_s17, %s1601_s22  ;;  %p1603_p6 = pneg %p1806_p2 }
  0x29   : > { %p1607_p9 = scmp.lt.u32.totalorder %s1800_s17, %s3163_s2  ;;  %p1608_p10 = scmp.lt.u32.totalorder %s1606_s25, %s1601_s22 }
  0x2a   : > { %p1604_p7 = pnand %p1603_p6, %p1602_p5  ;;  %p1610_p12 = scmp.lt.u32.totalorder %s1601_s22, %s1800_s17 }
  0x2b   : > { %p1609_p11 = por %p1608_p10, %p1607_p9 }
  0x2c   : > { %p1605_p8 = pneg %p1604_p7 }
  0x2d   : > { %p1611_p0 = por %p1610_p12, %p1609_p11 }
  0x2f   : > { %p1612_p13 = pnand %p1611_p0, %p1605_p8 }
  0x31   : > { %1615 = shalt.err (!%p1612_p13)
}
  0x32   : > { %s1616_s28 = scalar_lea.vmem %s1804_s19, 256  ;;  %s1705_s29 = smov [#allocation5]  }
  0x33   : > { %p1617_p5 = scmp.ne.s32.totalorder %s1804_s19, %s1616_s28  ;;  %s1621_s0 = sshll.u32 %s1705_s29, 4  ;;  %s1622_s0 = int_to_ptr.vmem [resolvable:$false] %s1621_s0 }
  0x34   : > { %s1623_s8 = scalar_lea.vmem %s1622_s0, 512  ;;  %p1624_p4 = scmp.lt.s32.totalorder %s1804_s19, %s1622_s0 }
  0x35   : > { %p1619_p7 = pnand %p1617_p5, %p1603_p6  ;;  %p1625_p9 = scmp.lt.s32.totalorder %s1623_s8, %s1616_s28 }
  0x37   : > { %p1620_p3 = pneg %p1619_p7  ;;  %p1626_p10 = por %p1625_p9, %p1624_p4 }
  0x39   : > { %p1627_p11 = pnand %p1626_p10, %p1620_p3 }
  0x3b   : > { %1630 = shalt.err (!%p1627_p11)
}
  0x3c   : > { %1523 = dma.hbm_to_vmem [thread:$0]  (!%p1806_p2), %s1800_s17, 256, %s1804_s19, %s127_s21  }
  0x3d   : > { %p3171_p13 = scmp.lt.s32.totalorder %s1701_s5, 3  ;;  %p3172_p8 = scmp.ge.s32.totalorder %s1701_s5, 1 }
  0x3e   : > { %s1851_s18 = scalar_lea.hbm %s3164_s3, %s1514_s14  ;;  %s149_s22 = scalar_lea.vmem [#allocation7], %s1452_s13 }
  0x3f   : > { %p1842_p12 = pnand %p3172_p8, %p3171_p13  ;;  %s157_s23 = sshll.u32 %s149_s22, 4  ;;  %s158_s23 = int_to_ptr.vmem [resolvable:$true] %s157_s23 }
  0x40   : > { %s146_s17 = scalar_lea.sflag [#allocation8], %s1791_s12  ;;  %s1631_s19 = scalar_lea.hbm %s1851_s18, 256 }
  0x41   : > { %s3173_s9 = scalar_select %p1842_p12, 1, 0 }
  0x42   : > { %p1632_p3 = scmp.ne.s32.totalorder %s1851_s18, %s1631_s19  ;;  %s1636_s14 = scalar_lea.hbm %s3164_s3, 512 }
  0x43   : > { %p1637_p5 = scmp.lt.u32.totalorder %s1851_s18, %s3164_s3  ;;  %p1638_p7 = scmp.lt.u32.totalorder %s1636_s14, %s1631_s19 }
  0x44   : > { %p1634_p4 = pnand %p1632_p3, %p1603_p6  ;;  %p1640_p10 = scmp.lt.u32.totalorder %s1631_s19, %s1851_s18 }
  0x45   : > { %p1639_p9 = por %p1638_p7, %p1637_p5 }
  0x46   : > { %p1635_p0 = pneg %p1634_p4 }
  0x47   : > { %p1641_p11 = por %p1640_p10, %p1639_p9 }
  0x49   : > { %p1642_p13 = pnand %p1641_p11, %p1635_p0 }
  0x4b   : > { %1645 = shalt.err (!%p1642_p13)
}
  0x4c   : > { %s1646_s12 = scalar_lea.vmem %s158_s23, 256  ;;  %s1706_s13 = smov [#allocation7]  }
  0x4d   : > { %p1647_p8 = scmp.ne.s32.totalorder %s158_s23, %s1646_s12  ;;  %s1651_s26 = sshll.u32 %s1706_s13, 4  ;;  %s1652_s26 = int_to_ptr.vmem [resolvable:$false] %s1651_s26 }
  0x4e   : > { %s1653_s27 = scalar_lea.vmem %s1652_s26, 512  ;;  %p1654_p1 = scmp.lt.s32.totalorder %s158_s23, %s1652_s26 }
  0x4f   : > { %p1649_p3 = pnand %p1647_p8, %p1603_p6  ;;  %p1655_p12 = scmp.lt.s32.totalorder %s1653_s27, %s1646_s12 }
  0x51   : > { %p1650_p4 = pneg %p1649_p3  ;;  %p1656_p5 = por %p1655_p12, %p1654_p1 }
  0x53   : > { %p1657_p7 = pnand %p1656_p5, %p1650_p4 }
  0x55   : > { %1660 = shalt.err (!%p1657_p7)
}
  0x56   : > { %1526 = dma.hbm_to_vmem [thread:$0]  (!%p1806_p2), %s1851_s18, 256, %s158_s23, %s146_s17  }
  0x57   : > { %p3174_p0 = scmp.ne.s32.totalorder %s3173_s9, 0 }
  0x58   : > { %s168_s28 = sand.u32 (!%p3174_p0), 1, %s1693_s1   ;;  %p3175_p6 = scmp.ne.s32.totalorder (!%p3174_p0), %s3169_s11, 0 }
  0x59   : > { %166 = sbr.rel (%p3174_p0) target bundleno = 490 (0x1ea), region = 28  ;;  %s1459_s29 = sshll.u32 (!%p3174_p0), %s168_s28, 4 }
  0x5a   : > { %s169_s0 = scalar_lea.sflag (!%p3174_p0), [#allocation6], %s168_s28  ;;  %s1878_s8 = scalar_lea.vmem (!%p3174_p0), [#allocation5], %s1459_s29 }
  0x60   : > { %1680 = dma.done.wait (%p3175_p6), %s169_s0, 256  }
  0x61   : > { %1682 = vsyncadd (%p3175_p6), %s169_s0, 4294967040  ;;  %s178_s15 = scalar_lea.sflag [#allocation8], %s168_s28  ;;  %s1884_s20 = scalar_lea.vmem [#allocation7], %s1459_s29 }
  0x62   : > { %1684 = dma.done.wait (%p3175_p6), %s178_s15, 256  }
  0x63   : > { %1686 = vsyncadd (%p3175_p6), %s178_s15, 4294967040  ;;  %s1463_s9 = sadd.s32 4294967295, %s1767_s6  ;;  %s208_s16 = sld [smem:[#allocation3 + %s1767_s6]] }
  0x64   : > { %p218_p1 = scmp.gt.s32.totalorder %s1463_s9, 0  ;;  %s1893_s18 = sld [smem:[#allocation3 + %s1767_s6]] }
  0x65   : > { %p3176_p9 = scmp.eq.s32.totalorder %s1767_s6, 0 }
  0x66   : > { %s3182_s9 = smov (!%p218_p1, %s1463_s9), 0 }
  0x67   : > { %s220_s22 = sld [smem:[#allocation3 + %s3182_s9]] }
  0x69   : > { %s1461_s23 = sshll.u32 %s208_s16, 4 }
  0x6a   : > { %p210_p2 = scmp.lt.s32.totalorder %s1461_s23, 31 }
  0x6c   : > { %s3184_s23 = smov (!%p210_p2, %s1461_s23), 31 }
  0x6d   : > { %s1462_s17 = sshll.u32 %s3184_s23, 3  ;;  %p222_p12 = scmp.ne.s32.totalorder %s220_s22, %s1893_s18 }
  0x6e   : > { %s1899_s5 = scalar_lea.vmem %s3165_s4, %s1462_s17 }
  0x6f   : > { %p223_p10 = por %p222_p12, %p3176_p9 }
  0x70   : > { %vm227_vm0 = vcmask (%p223_p10), 7168   ;;  %v1707_v0 = vmov (%p223_p10), 0.0  }
  0x71   : > { %226 = sbr.rel (!%p223_p10) target bundleno = 121 (0x79), region = 40  ;;  %228 = vst.msk [vmem:[%s1899_s5] sm:$0xff] (%p223_p10), %vm227_vm0, %v1707_v0  ;;  %229 = vst.msk [vmem:[%s1899_s5 + $0x8] sm:$0xff] (%p223_p10), %vm227_vm0, %v1707_v0 }
  0x72   : > { %230 = vst.msk [vmem:[%s1899_s5 + $0x10] sm:$0xff] (%p223_p10), %vm227_vm0, %v1707_v0  ;;  %231 = vst.msk [vmem:[%s1899_s5 + $0x18] sm:$0xff] (%p223_p10), %vm227_vm0, %v1707_v0 }
  0x73   : > { %232 = vst.msk [vmem:[%s1899_s5 + $0x20] sm:$0xff] (%p223_p10), %vm227_vm0, %v1707_v0  ;;  %233 = vst.msk [vmem:[%s1899_s5 + $0x28] sm:$0xff] (%p223_p10), %vm227_vm0, %v1707_v0 }
  0x74   : > { %234 = vst.msk [vmem:[%s1899_s5 + $0x30] sm:$0xff] (%p223_p10), %vm227_vm0, %v1707_v0  ;;  %235 = vst.msk [vmem:[%s1899_s5 + $0x38] sm:$0xff] (%p223_p10), %vm227_vm0, %v1707_v0 }
  0x75   : > { %236 = vst.msk [vmem:[%s1899_s5 + $0x40] sm:$0xff] (%p223_p10), %vm227_vm0, %v1707_v0  ;;  %237 = vst.msk [vmem:[%s1899_s5 + $0x48] sm:$0xff] (%p223_p10), %vm227_vm0, %v1707_v0 }
  0x76   : > { %238 = vst.msk [vmem:[%s1899_s5 + $0x50] sm:$0xff] (%p223_p10), %vm227_vm0, %v1707_v0  ;;  %239 = vst.msk [vmem:[%s1899_s5 + $0x58] sm:$0xff] (%p223_p10), %vm227_vm0, %v1707_v0 }
  0x77   : > { %240 = vst.msk [vmem:[%s1899_s5 + $0x60] sm:$0xff] (%p223_p10), %vm227_vm0, %v1707_v0  ;;  %241 = vst.msk [vmem:[%s1899_s5 + $0x68] sm:$0xff] (%p223_p10), %vm227_vm0, %v1707_v0 }
  0x78   : > { %242 = vst.msk [vmem:[%s1899_s5 + $0x70] sm:$0xff] %vm227_vm0, %v1707_v0  ;;  %243 = vst.msk [vmem:[%s1899_s5 + $0x78] sm:$0xff] %vm227_vm0, %v1707_v0 }
  0x79 PF: > { %s244_s21 = sld [smem:[#allocation4 + %s1767_s6]] }
  0x7f   : > { %p1464_p11 = scmp.le.s32.totalorder %s244_s21, 0 }
  0x80   : > { %v249_v1 = vlaneseq (!%p1464_p11)  ;;  %s1465_s14 = sshll.u32 (!%p1464_p11), %s1893_s18, 7  ;;  %v267_v2 = vld [vmem:[%s1878_s8] sm:$0x1] (!%p1464_p11)  ;;  %v1467_v4 = vld [vmem:[%s1878_s8 + $0x1] sm:$0x1] (!%p1464_p11) }
  0x81   : > { %248 = sbr.rel (%p1464_p11) target bundleno = 490 (0x1ea), region = 44  ;;  %v1938_v3 = vstv (!%p1464_p11), %s1465_s14  ;;  %v1470_v5 = vld [vmem:[%s1878_s8 + $0x2] sm:$0x1] (!%p1464_p11)  ;;  %v1473_v10 = vld [vmem:[%s1878_s8 + $0x3] sm:$0x1] (!%p1464_p11) }
  0x82   : > { %v1942_v6 = vshrl.u32 (!%p1464_p11), %v249_v1, 7  ;;  %v270_v7 = vsub.s32 (!%p1464_p11), %v267_v2, %v1938_v3  ;;  %v333_v8 = vsub.s32 (!%p1464_p11), %v1467_v4, %v1938_v3  ;;  %v396_v9 = vsub.s32 (!%p1464_p11), %v1470_v5, %v1938_v3  ;;  %v1476_v12 = vld [vmem:[%s1878_s8 + $0x4] sm:$0x1] (!%p1464_p11)  ;;  %v1479_v15 = vld [vmem:[%s1878_s8 + $0x5] sm:$0x1] (!%p1464_p11) }
  0x83   : > { %v459_v11 = vsub.s32 (!%p1464_p11), %v1473_v10, %v1938_v3  ;;  %v522_v14 = vsub.s32 (!%p1464_p11), %v1476_v12, %v1938_v3  ;;  %v585_v16 = vsub.s32 (!%p1464_p11), %v1479_v15, %v1938_v3  ;;  %v1482_v17 = vld [vmem:[%s1878_s8 + $0x6] sm:$0x1] (!%p1464_p11)  ;;  %v1485_v18 = vld [vmem:[%s1878_s8 + $0x7] sm:$0x1] (!%p1464_p11)  ;;  %v1959_v19 = vld [vmem:[%s1884_s20] ss:$0 sm:$0xff] (!%p1464_p11) }
  0x84   : > { %v1951_v13 = vsub.s32 (!%p1464_p11), 0, %v1942_v6  ;;  %v1965_v21 = vld [vmem:[%s1884_s20 + $0x1] ss:$0 sm:$0xff] (!%p1464_p11)  ;;  %v1971_v23 = vld [vmem:[%s1884_s20 + $0x2] ss:$0 sm:$0xff] (!%p1464_p11)  ;;  %v648_v28 = vsub.s32 (!%p1464_p11), %v1482_v17, %v1938_v3  ;;  %v711_v29 = vsub.s32 (!%p1464_p11), %v1485_v18, %v1938_v3  ;;  %v2046_v57 = vadd.s32 (!%p1464_p11), 16, %v1942_v6 }
  0x85   : > { %v1994_v30 = vld [vmem:[%s1884_s20 + $0x3] ss:$0 sm:$0xff] (!%p1464_p11)  ;;  %v1488_v31 = vld [vmem:[%s1878_s8 + $0x8] sm:$0x1] (!%p1464_p11)  ;;  %v1491_v32 = vld [vmem:[%s1878_s8 + $0x9] sm:$0x1] (!%p1464_p11) }
  0x86   : > { %v1962_v20 = vrot.slane (!%p1464_p11), %v270_v7, %v1951_v13  ;;  %v1968_v22 = vrot.slane (!%p1464_p11), %v333_v8, %v1951_v13  ;;  %v1974_v24 = vrot.slane (!%p1464_p11), %v396_v9, %v1951_v13  ;;  %v1977_v25 = vrot.slane (!%p1464_p11), %v459_v11, %v1951_v13  ;;  %v1494_v36 = vld [vmem:[%s1878_s8 + $0xa] sm:$0x1] (!%p1464_p11)  ;;  %v2005_v38 = vld [vmem:[%s1884_s20 + $0x4] ss:$0 sm:$0xff] (!%p1464_p11)  ;;  %v1497_v43 = vld [vmem:[%s1878_s8 + $0xb] sm:$0x1] (!%p1464_p11) }
  0x87   : > { %v1980_v26 = vrot.slane (!%p1464_p11), %v522_v14, %v1951_v13  ;;  %v1983_v27 = vrot.slane (!%p1464_p11), %v585_v16, %v1951_v13  ;;  %v2010_v39 = vrot.slane (!%p1464_p11), %v648_v28, %v1951_v13  ;;  %v2014_v41 = vrot.slane (!%p1464_p11), %v711_v29, %v1951_v13  ;;  %v2019_v45 = vld [vmem:[%s1884_s20 + $0x5] ss:$0 sm:$0xff] (!%p1464_p11)  ;;  %v2030_v51 = vld [vmem:[%s1884_s20 + $0x6] ss:$0 sm:$0xff] (!%p1464_p11)  ;;  %v1500_v54 = vld [vmem:[%s1878_s8 + $0xc] sm:$0x1] (!%p1464_p11) }
  0x88   : > { %vm275_vm1 = vcmp.eq.s32.totalorder %v1942_v6, %v1962_v20  ;;  %vm338_vm2 = vcmp.eq.s32.totalorder %v1942_v6, %v1968_v22  ;;  %vm401_vm3 = vcmp.eq.s32.totalorder %v1942_v6, %v1974_v24  ;;  %vm464_vm4 = vcmp.eq.s32.totalorder %v1942_v6, %v1977_v25  ;;  %v2041_v56 = vld [vmem:[%s1884_s20 + $0x7] ss:$0 sm:$0xff]  ;;  %v1503_v60 = vld [vmem:[%s1878_s8 + $0xd] sm:$0x1]  ;;  %v1506_v61 = vld [vmem:[%s1878_s8 + $0xe] sm:$0x1] }
  0x89   : > { %v297_v33 = vsel %vm275_vm1, %v1959_v19, 0.0  ;;  %v360_v34 = vsel %vm338_vm2, %v1965_v21, 0.0  ;;  %v423_v35 = vsel %vm401_vm3, %v1971_v23, 0.0  ;;  %vm527_vm5 = vcmp.eq.s32.totalorder %v1942_v6, %v1980_v26  ;;  %v2055_v63 = vld [vmem:[%s1884_s20 + $0x8] ss:$0 sm:$0xff] }
  0x8a   : > { %v376_v37 = vadd.f32 %v360_v34, %v297_v33  ;;  %v486_v40 = vsel %vm464_vm4, %v1994_v30, 0.0  ;;  %v774_v42 = vsub.s32 %v1488_v31, %v1938_v3  ;;  %vm590_vm6 = vcmp.eq.s32.totalorder %v1942_v6, %v1983_v27  ;;  %v1509_v1 = vld [vmem:[%s1878_s8 + $0xf] sm:$0x1]  ;;  %v2063_v5 = vld [vmem:[%s1884_s20 + $0x9] ss:$0 sm:$0xff] }
  0x8b   : > { %v837_v46 = vsub.s32 %v1491_v32, %v1938_v3  ;;  %v900_v47 = vsub.s32 %v1494_v36, %v1938_v3  ;;  %v549_v48 = vsel %vm527_vm5, %v2005_v38, 0.0  ;;  %vm653_vm7 = vcmp.eq.s32.totalorder %v1942_v6, %v2010_v39  ;;  %v2087_v28 = vld [vmem:[%s1884_s20 + $0xa] ss:$0 sm:$0xff]  ;;  %v2103_v34 = vld [vmem:[%s1884_s20 + $0xb] ss:$0 sm:$0xff] }
  0x8c   : > { %v439_v44 = vadd.f32 %v423_v35, %v376_v37  ;;  %v2027_v49 = vrot.slane %v774_v42, %v1951_v13  ;;  %v963_v53 = vsub.s32 %v1497_v43, %v1938_v3  ;;  %v612_v55 = vsel %vm590_vm6, %v2019_v45, 0.0  ;;  %v2120_v42 = vld [vmem:[%s1884_s20 + $0xc] ss:$0 sm:$0xff] }
  0x8d   : > { %v2035_v52 = vrot.slane %v837_v46, %v1951_v13  ;;  %vm716_vm8 = vcmp.eq.s32.totalorder %v1942_v6, %v2014_v41  ;;  %v2049_v59 = vrot.slane %v900_v47, %v1951_v13  ;;  %v675_v62 = vsel %vm653_vm7, %v2030_v51, 0.0  ;;  %v2130_v47 = vld [vmem:[%s1884_s20 + $0xd] ss:$0 sm:$0xff] }
  0x8e   : > { %v502_v50 = vadd.f32 %v486_v40, %v439_v44  ;;  %vm779_vm9 = vcmp.eq.s32.totalorder %v1942_v6, %v2027_v49  ;;  %v1026_v0 = vsub.s32 %v1500_v54, %v1938_v3  ;;  %v738_v4 = vsel %vm716_vm8, %v2041_v56, 0.0  ;;  %v2141_v54 = vld [vmem:[%s1884_s20 + $0xf] ss:$0 sm:$0xff] }
  0x8f   : > { %vm842_vm10 = vcmp.eq.s32.totalorder %v1942_v6, %v2035_v52  ;;  %v2068_v7 = vrot.slane %v963_v53, %v1951_v13  ;;  %v1089_v8 = vsub.s32 %v1503_v60, %v1938_v3  ;;  %v1152_v9 = vsub.s32 %v1506_v61, %v1938_v3  ;;  %v2138_v53 = vld [vmem:[%s1884_s20 + $0xe] ss:$0 sm:$0xff] }
  0x90   : > { %v565_v58 = vadd.f32 %v549_v48, %v502_v50  ;;  %vm277_vm11 = vcmp.eq.s32.totalorder %v2046_v57, %v1962_v20  ;;  %vm340_vm12 = vcmp.eq.s32.totalorder %v2046_v57, %v1968_v22  ;;  %v801_v11 = vsel %vm779_vm9, %v2055_v63, 0.0 }
  0x91   : > { %vm905_vm13 = vcmp.eq.s32.totalorder %v1942_v6, %v2049_v59  ;;  %v1215_v12 = vsub.s32 %v1509_v1, %v1938_v3  ;;  %v864_v14 = vsel %vm842_vm10, %v2063_v5, 0.0  ;;  %v2082_v15 = vrot.slane %v1026_v0, %v1951_v13 }
  0x92   : > { %v628_v2 = vadd.f32 %v612_v55, %v565_v58  ;;  %v299_v16 = vsel %vm277_vm11, %v1959_v19, 0.0  ;;  %v362_v17 = vsel %vm340_vm12, %v1965_v21, 0.0  ;;  %vm968_vm14 = vcmp.eq.s32.totalorder %v1942_v6, %v2068_v7 }
  0x93   : > { %v378_v29 = vadd.f32 %v362_v17, %v299_v16  ;;  %vm403_vm15 = vcmp.eq.s32.totalorder %v2046_v57, %v1974_v24  ;;  %v2094_v3 = vrot.slane %v1089_v8, %v1951_v13  ;;  %v2097_v31 = vrot.slane %v1152_v9, %v1951_v13 }
  0x94   : > { %v691_v10 = vadd.f32 %v675_v62, %v628_v2  ;;  %v425_v32 = vsel %vm403_vm15, %v1971_v23, 0.0  ;;  %vm466_vm0 = vcmp.eq.s32.totalorder %v2046_v57, %v1977_v25  ;;  %v2106_v35 = vrot.slane %v1215_v12, %v1951_v13 }
  0x95   : > { %v441_v36 = vadd.f32 %v425_v32, %v378_v29  ;;  %v488_v37 = vsel %vm466_vm0, %v1994_v30, 0.0  ;;  %v927_v40 = vsel %vm905_vm13, %v2087_v28, 0.0  ;;  %vm1031_vm1 = vcmp.eq.s32.totalorder %v1942_v6, %v2082_v15 }
  0x96   : > { %v754_v18 = vadd.f32 %v738_v4, %v691_v10  ;;  %vm529_vm2 = vcmp.eq.s32.totalorder %v2046_v57, %v1980_v26  ;;  %vm592_vm3 = vcmp.eq.s32.totalorder %v2046_v57, %v1983_v27  ;;  %vm655_vm4 = vcmp.eq.s32.totalorder %v2046_v57, %v2010_v39 }
  0x97   : > { %v504_v43 = vadd.f32 %v488_v37, %v441_v36  ;;  %v551_v44 = vsel %vm529_vm2, %v2005_v38, 0.0  ;;  %v990_v46 = vsel %vm968_vm14, %v2103_v34, 0.0  ;;  %vm1094_vm5 = vcmp.eq.s32.totalorder %v1942_v6, %v2094_v3 }
  0x98   : > { %v817_v33 = vadd.f32 %v801_v11, %v754_v18  ;;  %vm1157_vm6 = vcmp.eq.s32.totalorder %v1942_v6, %v2097_v31  ;;  %v614_v48 = vsel %vm592_vm3, %v2019_v45, 0.0  ;;  %vm1220_vm7 = vcmp.eq.s32.totalorder %v1942_v6, %v2106_v35 }
  0x99   : > { %v567_v55 = vadd.f32 %v551_v44, %v504_v43  ;;  %vm718_vm8 = vcmp.eq.s32.totalorder %v2046_v57, %v2014_v41  ;;  %v1053_v58 = vsel %vm1031_vm1, %v2120_v42, 0.0  ;;  %v677_v60 = vsel %vm655_vm4, %v2030_v51, 0.0 }
  0x9a   : > { %v880_v13 = vadd.f32 %v864_v14, %v817_v33  ;;  %vm781_vm9 = vcmp.eq.s32.totalorder %v2046_v57, %v2027_v49  ;;  %vm844_vm10 = vcmp.eq.s32.totalorder %v2046_v57, %v2035_v52  ;;  %v1116_v62 = vsel %vm1094_vm5, %v2130_v47, 0.0 }
  0x9b   : > { %v630_v0 = vadd.f32 %v614_v48, %v567_v55  ;;  %v1179_v1 = vsel %vm1157_vm6, %v2138_v53, 0.0  ;;  %v1242_v2 = vsel %vm1220_vm7, %v2141_v54, 0.0  ;;  %v740_v4 = vsel %vm718_vm8, %v2041_v56, 0.0 }
  0x9c   : > { %v943_v50 = vadd.f32 %v927_v40, %v880_v13  ;;  %vm907_vm11 = vcmp.eq.s32.totalorder %v2046_v57, %v2049_v59  ;;  %v803_v10 = vsel %vm781_vm9, %v2055_v63, 0.0  ;;  %v866_v11 = vsel %vm844_vm10, %v2063_v5, 0.0 }
  0x9d   : > { %v693_v9 = vadd.f32 %v677_v60, %v630_v0  ;;  %vm970_vm12 = vcmp.eq.s32.totalorder %v2046_v57, %v2068_v7  ;;  %vm1033_vm13 = vcmp.eq.s32.totalorder %v2046_v57, %v2082_v15  ;;  %vm1096_vm14 = vcmp.eq.s32.totalorder %v2046_v57, %v2094_v3 }
  0x9e   : > { %v1006_v61 = vadd.f32 %v990_v46, %v943_v50  ;;  %v2171_v12 = vadd.s32 24, %v1942_v6  ;;  %v929_v17 = vsel %vm907_vm11, %v2087_v28, 0.0  ;;  %vm1159_vm15 = vcmp.eq.s32.totalorder %v2046_v57, %v2097_v31 }
  0x9f   : > { %v756_v16 = vadd.f32 %v740_v4, %v693_v9  ;;  %vm1222_vm4 = vcmp.eq.s32.totalorder %v2046_v57, %v2106_v35  ;;  %v992_v43 = vsel %vm970_vm12, %v2103_v34, 0.0  ;;  %v1055_v46 = vsel %vm1033_vm13, %v2120_v42, 0.0 }
  0xa0   : > { %v1069_v8 = vadd.f32 %v1053_v58, %v1006_v61  ;;  %vm278_vm0 = vcmp.eq.s32.totalorder %v2171_v12, %v1962_v20  ;;  %vm341_vm1 = vcmp.eq.s32.totalorder %v2171_v12, %v1968_v22  ;;  %vm404_vm2 = vcmp.eq.s32.totalorder %v2171_v12, %v1974_v24 }
  0xa1   : > { %vm467_vm3 = vcmp.eq.s32.totalorder %v2171_v12, %v1977_v25  ;;  %v819_v29 = vadd.f32 %v803_v10, %v756_v16  ;;  %v300_v32 = vsel %vm278_vm0, %v1959_v19, 0.0  ;;  %v363_v33 = vsel %vm341_vm1, %v1965_v21, 0.0 }
  0xa2   : > { %v1132_v14 = vadd.f32 %v1116_v62, %v1069_v8  ;;  %v379_v36 = vadd.f32 %v363_v33, %v300_v32  ;;  %v426_v37 = vsel %vm404_vm2, %v1971_v23, 0.0  ;;  %vm530_vm5 = vcmp.eq.s32.totalorder %v2171_v12, %v1980_v26 }
  0xa3   : > { %v882_v13 = vadd.f32 %v866_v11, %v819_v29  ;;  %v489_v44 = vsel %vm467_vm3, %v1994_v30, 0.0  ;;  %v1118_v48 = vsel %vm1096_vm14, %v2130_v47, 0.0  ;;  %vm593_vm6 = vcmp.eq.s32.totalorder %v2171_v12, %v1983_v27 }
  0xa4   : > { %v1195_v18 = vadd.f32 %v1179_v1, %v1132_v14  ;;  %v442_v50 = vadd.f32 %v426_v37, %v379_v36  ;;  %v1181_v58 = vsel %vm1159_vm15, %v2138_v53, 0.0  ;;  %v1244_v60 = vsel %vm1222_vm4, %v2141_v54, 0.0 }
  0xa5   : > { %v945_v55 = vadd.f32 %v929_v17, %v882_v13  ;;  %v552_v61 = vsel %vm530_vm5, %v2005_v38, 0.0  ;;  %vm656_vm7 = vcmp.eq.s32.totalorder %v2171_v12, %v2010_v39  ;;  %vm719_vm8 = vcmp.eq.s32.totalorder %v2171_v12, %v2014_v41 }
  0xa6   : > { %v1258_v40 = vadd.f32 %v1242_v2, %v1195_v18  ;;  %v505_v62 = vadd.f32 %v489_v44, %v442_v50  ;;  %v2217_v0 = vadd.s32 8, %v1942_v6  ;;  %v615_v2 = vsel %vm593_vm6, %v2019_v45, 0.0 }
  0xa7   : > { %v1008_v1 = vadd.f32 %v992_v43, %v945_v55  ;;  %vm782_vm9 = vcmp.eq.s32.totalorder %v2171_v12, %v2027_v49  ;;  %v2223_v57 = vadd.s32 40, %v1942_v6  ;;  %vm845_vm10 = vcmp.eq.s32.totalorder %v2171_v12, %v2035_v52 }
  0xa8   : > { %1290 = vadd.xlane.f32.xlu0 %v1258_v40  ;;  %v568_v4 = vadd.f32 %v552_v61, %v505_v62  ;;  %v2228_v8 = vadd.s32 32, %v1942_v6  ;;  %v2231_v9 = vadd.s32 56, %v1942_v6  ;;  %v678_v11 = vsel %vm656_vm7, %v2030_v51, 0.0 }
  0xa9   : > { %v1071_v10 = vadd.f32 %v1055_v46, %v1008_v1  ;;  %v741_v14 = vsel %vm719_vm8, %v2041_v56, 0.0  ;;  %v2236_v16 = vadd.s32 48, %v1942_v6  ;;  %v804_v18 = vsel %vm782_vm9, %v2055_v63, 0.0 }
  0xaa   : > { %v631_v17 = vadd.f32 %v615_v2, %v568_v4  ;;  %vm908_vm11 = vcmp.eq.s32.totalorder %v2171_v12, %v2049_v59  ;;  %vm276_vm12 = vcmp.eq.s32.totalorder %v2217_v0, %v1962_v20  ;;  %v867_v32 = vsel %vm845_vm10, %v2063_v5, 0.0 }
  0xab   : > { %v1134_v29 = vadd.f32 %v1118_v48, %v1071_v10  ;;  %v298_v33 = vsel %vm276_vm12, %v1959_v19, 0.0  ;;  %vm339_vm13 = vcmp.eq.s32.totalorder %v2217_v0, %v1968_v22  ;;  %vm402_vm14 = vcmp.eq.s32.totalorder %v2217_v0, %v1974_v24 }
  0xac   : > { %v694_v36 = vadd.f32 %v678_v11, %v631_v17  ;;  %v361_v37 = vsel %vm339_vm13, %v1965_v21, 0.0  ;;  %vm465_vm15 = vcmp.eq.s32.totalorder %v2217_v0, %v1977_v25  ;;  %v930_v13 = vsel %vm908_vm11, %v2087_v28, 0.0 }
  0xad   : > { %v1197_v40 = vadd.f32 %v1181_v58, %v1134_v29  ;;  %v377_v43 = vadd.f32 %v361_v37, %v298_v33  ;;  %v424_v44 = vsel %vm402_vm14, %v1971_v23, 0.0  ;;  %vm971_vm0 = vcmp.eq.s32.totalorder %v2171_v12, %v2068_v7 }
  0xae   : > { %v757_v46 = vadd.f32 %v741_v14, %v694_v36  ;;  %v487_v48 = vsel %vm465_vm15, %v1994_v30, 0.0  ;;  %vm528_vm1 = vcmp.eq.s32.totalorder %v2217_v0, %v1980_v26  ;;  %vm1034_vm2 = vcmp.eq.s32.totalorder %v2171_v12, %v2082_v15 }
  0xaf   : > { %v1260_v50 = vadd.f32 %v1244_v60, %v1197_v40  ;;  %v440_v55 = vadd.f32 %v424_v44, %v377_v43  ;;  %vm591_vm3 = vcmp.eq.s32.totalorder %v2217_v0, %v1983_v27  ;;  %vm1097_vm4 = vcmp.eq.s32.totalorder %v2171_v12, %v2094_v3 }
  0xb0   : > { %v820_v58 = vadd.f32 %v804_v18, %v757_v46  ;;  %vm1160_vm5 = vcmp.eq.s32.totalorder %v2171_v12, %v2097_v31  ;;  %v550_v61 = vsel %vm528_vm1, %v2005_v38, 0.0  ;;  %vm1223_vm6 = vcmp.eq.s32.totalorder %v2171_v12, %v2106_v35 }
  0xb1   : > { %1294 = vadd.xlane.f32.xlu1 %v1260_v50  ;;  %v503_v60 = vadd.f32 %v487_v48, %v440_v55  ;;  %vm654_vm7 = vcmp.eq.s32.totalorder %v2217_v0, %v2010_v39  ;;  %vm717_vm8 = vcmp.eq.s32.totalorder %v2217_v0, %v2014_v41  ;;  %v993_v1 = vsel %vm971_vm0, %v2103_v34, 0.0 }
  0xb2   : > { %v883_v62 = vadd.f32 %v867_v32, %v820_v58  ;;  %v613_v2 = vsel %vm591_vm3, %v2019_v45, 0.0  ;;  %vm780_vm9 = vcmp.eq.s32.totalorder %v2217_v0, %v2027_v49  ;;  %v1056_v4 = vsel %vm1034_vm2, %v2120_v42, 0.0 }
  0xb3   : > { %v1119_v10 = vsel %vm1097_vm4, %v2130_v47, 0.0  ;;  %v1182_v11 = vsel %vm1160_vm5, %v2138_v53, 0.0  ;;  %v566_v14 = vadd.f32 %v550_v61, %v503_v60  ;;  %v1245_v18 = vsel %vm1223_vm6, %v2141_v54, 0.0 }
  0xb4   : > { %v946_v17 = vadd.f32 %v930_v13, %v883_v62  ;;  %v676_v29 = vsel %vm654_vm7, %v2030_v51, 0.0  ;;  %v739_v32 = vsel %vm717_vm8, %v2041_v56, 0.0  ;;  %v802_v36 = vsel %vm780_vm9, %v2055_v63, 0.0 }
  0xb5   : > { %v629_v33 = vadd.f32 %v613_v2, %v566_v14  ;;  %vm843_vm10 = vcmp.eq.s32.totalorder %v2217_v0, %v2035_v52  ;;  %vm906_vm11 = vcmp.eq.s32.totalorder %v2217_v0, %v2049_v59  ;;  %vm969_vm12 = vcmp.eq.s32.totalorder %v2217_v0, %v2068_v7 }
  0xb6   : > { %v1009_v12 = vadd.f32 %v993_v1, %v946_v17  ;;  %vm280_vm13 = vcmp.eq.s32.totalorder %v2223_v57, %v1962_v20  ;;  %vm343_vm14 = vcmp.eq.s32.totalorder %v2223_v57, %v1968_v22  ;;  %vm406_vm15 = vcmp.eq.s32.totalorder %v2223_v57, %v1974_v24 }
  0xb7   : > { %v692_v37 = vadd.f32 %v676_v29, %v629_v33  ;;  %v302_v40 = vsel %vm280_vm13, %v1959_v19, 0.0  ;;  %v365_v13 = vsel %vm343_vm14, %v1965_v21, 0.0  ;;  %v428_v46 = vsel %vm406_vm15, %v1971_v23, 0.0 }
  0xb8   : > { %v1072_v43 = vadd.f32 %v1056_v4, %v1009_v12  ;;  %v381_v44 = vadd.f32 %v365_v13, %v302_v40  ;;  %vm469_vm0 = vcmp.eq.s32.totalorder %v2223_v57, %v1977_v25  ;;  %v865_v50 = vsel %vm843_vm10, %v2063_v5, 0.0 }
  0xb9   : > { %v755_v48 = vadd.f32 %v739_v32, %v692_v37  ;;  %v491_v55 = vsel %vm469_vm0, %v1994_v30, 0.0  ;;  %vm532_vm1 = vcmp.eq.s32.totalorder %v2223_v57, %v1980_v26  ;;  %v928_v61 = vsel %vm906_vm11, %v2087_v28, 0.0 }
  0xba   : > { %v1135_v58 = vadd.f32 %v1119_v10, %v1072_v43  ;;  %v444_v60 = vadd.f32 %v428_v46, %v381_v44  ;;  %vm595_vm2 = vcmp.eq.s32.totalorder %v2223_v57, %v1983_v27  ;;  %v991_v1 = vsel %vm969_vm12, %v2103_v34, 0.0 }
  0xbb   : > { %v818_v62 = vadd.f32 %v802_v36, %v755_v48  ;;  %vm1032_vm3 = vcmp.eq.s32.totalorder %v2217_v0, %v2082_v15  ;;  %v554_v2 = vsel %vm532_vm1, %v2005_v38, 0.0  ;;  %vm1095_vm4 = vcmp.eq.s32.totalorder %v2217_v0, %v2094_v3 }
  0xbc   : > { %v1198_v4 = vadd.f32 %v1182_v11, %v1135_v58  ;;  %v507_v10 = vadd.f32 %v491_v55, %v444_v60  ;;  %vm658_vm5 = vcmp.eq.s32.totalorder %v2223_v57, %v2010_v39  ;;  %vm1158_vm6 = vcmp.eq.s32.totalorder %v2217_v0, %v2097_v31 }
  0xbd   : > { %v881_v14 = vadd.f32 %v865_v50, %v818_v62  ;;  %vm1221_vm7 = vcmp.eq.s32.totalorder %v2217_v0, %v2106_v35  ;;  %v617_v17 = vsel %vm595_vm2, %v2019_v45, 0.0  ;;  %vm721_vm8 = vcmp.eq.s32.totalorder %v2223_v57, %v2014_v41 }
  0xbe   : > { %v1261_v29 = vadd.f32 %v1245_v18, %v1198_v4  ;;  %v570_v32 = vadd.f32 %v554_v2, %v507_v10  ;;  %vm784_vm9 = vcmp.eq.s32.totalorder %v2223_v57, %v2027_v49  ;;  %v1054_v33 = vsel %vm1032_vm3, %v2120_v42, 0.0 }
  0xbf   : > { %v944_v11 = vadd.f32 %v928_v61, %v881_v14  ;;  %v680_v36 = vsel %vm658_vm5, %v2030_v51, 0.0  ;;  %vm847_vm10 = vcmp.eq.s32.totalorder %v2223_v57, %v2035_v52  ;;  %v1117_v18 = vsel %vm1095_vm4, %v2130_v47, 0.0 }
  0xc0   : > { %1296 = vadd.xlane.f32.xlu1 %v1261_v29  ;;  %v1180_v12 = vsel %vm1158_vm6, %v2138_v53, 0.0  ;;  %v1243_v37 = vsel %vm1221_vm7, %v2141_v54, 0.0  ;;  %v633_v40 = vadd.f32 %v617_v17, %v570_v32  ;;  %v743_v43 = vsel %vm721_vm8, %v2041_v56, 0.0 }
  0xc1   : > { %v1007_v13 = vadd.f32 %v991_v1, %v944_v11  ;;  %v806_v44 = vsel %vm784_vm9, %v2055_v63, 0.0  ;;  %vm279_vm11 = vcmp.eq.s32.totalorder %v2228_v8, %v1962_v20  ;;  %v869_v48 = vsel %vm847_vm10, %v2063_v5, 0.0 }
  0xc2   : > { %v696_v46 = vadd.f32 %v680_v36, %v633_v40  ;;  %vm910_vm12 = vcmp.eq.s32.totalorder %v2223_v57, %v2049_v59  ;;  %v301_v0 = vsel %vm279_vm11, %v1959_v19, 0.0  ;;  %vm342_vm13 = vcmp.eq.s32.totalorder %v2228_v8, %v1968_v22 }
  0xc3   : > { %v1070_v50 = vadd.f32 %v1054_v33, %v1007_v13  ;;  %vm405_vm14 = vcmp.eq.s32.totalorder %v2228_v8, %v1974_v24  ;;  %vm468_vm15 = vcmp.eq.s32.totalorder %v2228_v8, %v1977_v25  ;;  %vm973_vm0 = vcmp.eq.s32.totalorder %v2223_v57, %v2068_v7 }
  0xc4   : > { %v759_v55 = vadd.f32 %v743_v43, %v696_v46  ;;  %v364_v58 = vsel %vm342_vm13, %v1965_v21, 0.0  ;;  %v427_v61 = vsel %vm405_vm14, %v1971_v23, 0.0  ;;  %v932_v62 = vsel %vm910_vm12, %v2087_v28, 0.0 }
  0xc5   : > { %v1133_v60 = vadd.f32 %v1117_v18, %v1070_v50  ;;  %v380_v1 = vadd.f32 %v364_v58, %v301_v0  ;;  %vm531_vm1 = vcmp.eq.s32.totalorder %v2228_v8, %v1980_v26  ;;  %vm1036_vm2 = vcmp.eq.s32.totalorder %v2223_v57, %v2082_v15 }
  0xc6   : > { %v822_v2 = vadd.f32 %v806_v44, %v759_v55  ;;  %vm1099_vm3 = vcmp.eq.s32.totalorder %v2223_v57, %v2094_v3  ;;  %v490_v4 = vsel %vm468_vm15, %v1994_v30, 0.0  ;;  %v995_v14 = vsel %vm973_vm0, %v2103_v34, 0.0 }
  0xc7   : > { %v1196_v10 = vadd.f32 %v1180_v12, %v1133_v60  ;;  %v443_v17 = vadd.f32 %v427_v61, %v380_v1  ;;  %vm594_vm4 = vcmp.eq.s32.totalorder %v2228_v8, %v1983_v27  ;;  %vm1162_vm5 = vcmp.eq.s32.totalorder %v2223_v57, %v2097_v31 }
  0xc8   : > { %v885_v29 = vadd.f32 %v869_v48, %v822_v2  ;;  %vm1225_vm6 = vcmp.eq.s32.totalorder %v2223_v57, %v2106_v35  ;;  %v553_v32 = vsel %vm531_vm1, %v2005_v38, 0.0  ;;  %vm657_vm7 = vcmp.eq.s32.totalorder %v2228_v8, %v2010_v39 }
  0xc9   : > { %v1259_v11 = vadd.f32 %v1243_v37, %v1196_v10  ;;  %v506_v33 = vadd.f32 %v490_v4, %v443_v17  ;;  %vm720_vm8 = vcmp.eq.s32.totalorder %v2228_v8, %v2014_v41  ;;  %v616_v18 = vsel %vm594_vm4, %v2019_v45, 0.0 }
  0xca   : > { %v948_v36 = vadd.f32 %v932_v62, %v885_v29  ;;  %vm783_vm9 = vcmp.eq.s32.totalorder %v2228_v8, %v2027_v49  ;;  %vm846_vm10 = vcmp.eq.s32.totalorder %v2228_v8, %v2035_v52  ;;  %v1058_v12 = vsel %vm1036_vm2, %v2120_v42, 0.0 }
  0xcb   : > { %1292 = vadd.xlane.f32.xlu0 %v1259_v11  ;;  %v1121_v37 = vsel %vm1099_vm3, %v2130_v47, 0.0  ;;  %v1184_v40 = vsel %vm1162_vm5, %v2138_v53, 0.0  ;;  %v569_v13 = vadd.f32 %v553_v32, %v506_v33  ;;  %v1247_v44 = vsel %vm1225_vm6, %v2141_v54, 0.0 }
  0xcc   : > { %v1011_v43 = vadd.f32 %v995_v14, %v948_v36  ;;  %v679_v46 = vsel %vm657_vm7, %v2030_v51, 0.0  ;;  %v742_v48 = vsel %vm720_vm8, %v2041_v56, 0.0  ;;  %v805_v50 = vsel %vm783_vm9, %v2055_v63, 0.0 }
  0xcd   : > { %v632_v0 = vadd.f32 %v616_v18, %v569_v13  ;;  %v868_v55 = vsel %vm846_vm10, %v2063_v5, 0.0  ;;  %vm909_vm11 = vcmp.eq.s32.totalorder %v2228_v8, %v2049_v59  ;;  %vm282_vm12 = vcmp.eq.s32.totalorder %v2231_v9, %v1962_v20 }
  0xce   : > { %v1074_v58 = vadd.f32 %v1058_v12, %v1011_v43  ;;  %vm345_vm13 = vcmp.eq.s32.totalorder %v2231_v9, %v1968_v22  ;;  %vm408_vm14 = vcmp.eq.s32.totalorder %v2231_v9, %v1974_v24  ;;  %v304_v61 = vsel %vm282_vm12, %v1959_v19, 0.0 }
  0xcf   : > { %v695_v57 = vadd.f32 %v679_v46, %v632_v0  ;;  %v367_v60 = vsel %vm345_vm13, %v1965_v21, 0.0  ;;  %v430_v62 = vsel %vm408_vm14, %v1971_v23, 0.0  ;;  %vm471_vm15 = vcmp.eq.s32.totalorder %v2231_v9, %v1977_v25 }
  0xd0   : > { %v1137_v1 = vadd.f32 %v1121_v37, %v1074_v58  ;;  %v383_v2 = vadd.f32 %v367_v60, %v304_v61  ;;  %vm534_vm0 = vcmp.eq.s32.totalorder %v2231_v9, %v1980_v26  ;;  %vm972_vm1 = vcmp.eq.s32.totalorder %v2228_v8, %v2068_v7 }
  0xd1   : > { %v758_v4 = vadd.f32 %v742_v48, %v695_v57  ;;  %vm1035_vm2 = vcmp.eq.s32.totalorder %v2228_v8, %v2082_v15  ;;  %v493_v10 = vsel %vm471_vm15, %v1994_v30, 0.0  ;;  %v931_v17 = vsel %vm909_vm11, %v2087_v28, 0.0 }
  0xd2   : > { %v1200_v14 = vadd.f32 %v1184_v40, %v1137_v1  ;;  %v446_v29 = vadd.f32 %v430_v62, %v383_v2  ;;  %vm597_vm3 = vcmp.eq.s32.totalorder %v2231_v9, %v1983_v27  ;;  %vm1098_vm4 = vcmp.eq.s32.totalorder %v2228_v8, %v2094_v3 }
  0xd3   : > { %v821_v32 = vadd.f32 %v805_v50, %v758_v4  ;;  %vm1161_vm5 = vcmp.eq.s32.totalorder %v2228_v8, %v2097_v31  ;;  %v556_v11 = vsel %vm534_vm0, %v2005_v38, 0.0  ;;  %vm1224_vm6 = vcmp.eq.s32.totalorder %v2228_v8, %v2106_v35 }
  0xd4   : > { %v1263_v33 = vadd.f32 %v1247_v44, %v1200_v14  ;;  %v509_v36 = vadd.f32 %v493_v10, %v446_v29  ;;  %vm660_vm7 = vcmp.eq.s32.totalorder %v2231_v9, %v2010_v39  ;;  %v619_v12 = vsel %vm597_vm3, %v2019_v45, 0.0 }
  0xd5   : > { %v884_v18 = vadd.f32 %v868_v55, %v821_v32  ;;  %vm723_vm8 = vcmp.eq.s32.totalorder %v2231_v9, %v2014_v41  ;;  %vm786_vm9 = vcmp.eq.s32.totalorder %v2231_v9, %v2027_v49  ;;  %v994_v37 = vsel %vm972_vm1, %v2103_v34, 0.0 }
  0xd6   : > { %1300 = vadd.xlane.f32.xlu1 %v1263_v33  ;;  %v1057_v40 = vsel %vm1035_vm2, %v2120_v42, 0.0  ;;  %v1120_v13 = vsel %vm1098_vm4, %v2130_v47, 0.0  ;;  %v572_v43 = vadd.f32 %v556_v11, %v509_v36  ;;  %v1183_v46 = vsel %vm1161_vm5, %v2138_v53, 0.0 }
  0xd7   : > { %v947_v44 = vadd.f32 %v931_v17, %v884_v18  ;;  %v1246_v48 = vsel %vm1224_vm6, %v2141_v54, 0.0  ;;  %v682_v0 = vsel %vm660_vm7, %v2030_v51, 0.0  ;;  %v745_v55 = vsel %vm723_vm8, %v2041_v56, 0.0 }
  0xd8   : > { %v635_v50 = vadd.f32 %v619_v12, %v572_v43  ;;  %v808_v58 = vsel %vm786_vm9, %v2055_v63, 0.0  ;;  %vm849_vm10 = vcmp.eq.s32.totalorder %v2231_v9, %v2035_v52  ;;  %vm912_vm11 = vcmp.eq.s32.totalorder %v2231_v9, %v2049_v59 }
  0xd9   : > { %v1010_v57 = vadd.f32 %v994_v37, %v947_v44  ;;  %vm281_vm12 = vcmp.eq.s32.totalorder %v2236_v16, %v1962_v20  ;;  %vm344_vm13 = vcmp.eq.s32.totalorder %v2236_v16, %v1968_v22  ;;  %vm975_vm14 = vcmp.eq.s32.totalorder %v2231_v9, %v2068_v7 }
  0xda   : > { %v698_v8 = vadd.f32 %v682_v0, %v635_v50  ;;  %v303_v61 = vsel %vm281_vm12, %v1959_v19, 0.0  ;;  %v366_v60 = vsel %vm344_vm13, %v1965_v21, 0.0  ;;  %vm407_vm15 = vcmp.eq.s32.totalorder %v2236_v16, %v1974_v24 }
  0xdb   : > { %v1073_v62 = vadd.f32 %v1057_v40, %v1010_v57  ;;  %v382_v1 = vadd.f32 %v366_v60, %v303_v61  ;;  %vm470_vm0 = vcmp.eq.s32.totalorder %v2236_v16, %v1977_v25  ;;  %v429_v4 = vsel %vm407_vm15, %v1971_v23, 0.0 }
  0xdc   : > { %v761_v2 = vadd.f32 %v745_v55, %v698_v8  ;;  %v492_v10 = vsel %vm470_vm0, %v1994_v30, 0.0  ;;  %vm533_vm1 = vcmp.eq.s32.totalorder %v2236_v16, %v1980_v26  ;;  %v871_v17 = vsel %vm849_vm10, %v2063_v5, 0.0 }
  0xdd   : > { %v1136_v14 = vadd.f32 %v1120_v13, %v1073_v62  ;;  %v445_v29 = vadd.f32 %v429_v4, %v382_v1  ;;  %vm596_vm2 = vcmp.eq.s32.totalorder %v2236_v16, %v1983_v27  ;;  %v934_v11 = vsel %vm912_vm11, %v2087_v28, 0.0 }
  0xde   : > { %v824_v32 = vadd.f32 %v808_v58, %v761_v2  ;;  %v997_v33 = vsel %vm975_vm14, %v2103_v34, 0.0  ;;  %v555_v36 = vsel %vm533_vm1, %v2005_v38, 0.0  ;;  %vm1038_vm3 = vcmp.eq.s32.totalorder %v2231_v9, %v2082_v15 }
  0xdf   : > { %v1199_v18 = vadd.f32 %v1183_v46, %v1136_v14  ;;  %v508_v12 = vadd.f32 %v492_v10, %v445_v29  ;;  %vm659_vm4 = vcmp.eq.s32.totalorder %v2236_v16, %v2010_v39  ;;  %vm1101_vm5 = vcmp.eq.s32.totalorder %v2231_v9, %v2094_v3 }
  0xe0   : > { %v887_v37 = vadd.f32 %v871_v17, %v824_v32  ;;  %vm1164_vm6 = vcmp.eq.s32.totalorder %v2231_v9, %v2097_v31  ;;  %v618_v40 = vsel %vm596_vm2, %v2019_v45, 0.0  ;;  %vm1227_vm7 = vcmp.eq.s32.totalorder %v2231_v9, %v2106_v35 }
  0xe1   : > { %v1262_v13 = vadd.f32 %v1246_v48, %v1199_v18  ;;  %v571_v43 = vadd.f32 %v555_v36, %v508_v12  ;;  %vm722_vm8 = vcmp.eq.s32.totalorder %v2236_v16, %v2014_v41  ;;  %v681_v46 = vsel %vm659_vm4, %v2030_v51, 0.0 }
  0xe2   : > { %v950_v44 = vadd.f32 %v934_v11, %v887_v37  ;;  %vm785_vm9 = vcmp.eq.s32.totalorder %v2236_v16, %v2027_v49  ;;  %v1060_v0 = vsel %vm1038_vm3, %v2120_v42, 0.0  ;;  %v1123_v50 = vsel %vm1101_vm5, %v2130_v47, 0.0 }
  0xe3   : > { %1298 = vadd.xlane.f32.xlu0 %v1262_v13  ;;  %v634_v55 = vadd.f32 %v618_v40, %v571_v43  ;;  %vm848_vm10 = vcmp.eq.s32.totalorder %v2236_v16, %v2035_v52  ;;  %v1186_v48 = vsel %vm1164_vm6, %v2138_v53, 0.0  ;;  %v1249_v58 = vsel %vm1227_vm7, %v2141_v54, 0.0 }
  0xe4   : > { %v1013_v9 = vadd.f32 %v997_v33, %v950_v44  ;;  %v744_v57 = vsel %vm722_vm8, %v2041_v56, 0.0  ;;  %v807_v61 = vsel %vm785_vm9, %v2055_v63, 0.0  ;;  %vm911_vm11 = vcmp.eq.s32.totalorder %v2236_v16, %v2049_v59 }
  0xe5   : > { %v697_v8 = vadd.f32 %v681_v46, %v634_v55  ;;  %v2527_v60 = vadd.s32 72, %v1942_v6  ;;  %v870_v1 = vsel %vm848_vm10, %v2063_v5, 0.0  ;;  %vm974_vm12 = vcmp.eq.s32.totalorder %v2236_v16, %v2068_v7 }
  0xe6   : > { %v1076_v62 = vadd.f32 %v1060_v0, %v1013_v9  ;;  %vm1037_vm13 = vcmp.eq.s32.totalorder %v2236_v16, %v2082_v15  ;;  %v933_v33 = vsel %vm911_vm11, %v2087_v28, 0.0  ;;  %v996_v36 = vsel %vm974_vm12, %v2103_v34, 0.0 }
  0xe7   : > { %v760_v2 = vadd.f32 %v744_v57, %v697_v8  ;;  %vm284_vm14 = vcmp.eq.s32.totalorder %v2527_v60, %v1962_v20  ;;  %vm347_vm15 = vcmp.eq.s32.totalorder %v2527_v60, %v1968_v22  ;;  %vm410_vm0 = vcmp.eq.s32.totalorder %v2527_v60, %v1974_v24 }
  0xe8   : > { %v1139_v4 = vadd.f32 %v1123_v50, %v1076_v62  ;;  %v306_v10 = vsel %vm284_vm14, %v1959_v19, 0.0  ;;  %v369_v14 = vsel %vm347_vm15, %v1965_v21, 0.0  ;;  %v432_v17 = vsel %vm410_vm0, %v1971_v23, 0.0 }
  0xe9   : > { %v823_v29 = vadd.f32 %v807_v61, %v760_v2  ;;  %v385_v32 = vadd.f32 %v369_v14, %v306_v10  ;;  %vm473_vm1 = vcmp.eq.s32.totalorder %v2527_v60, %v1977_v25  ;;  %vm536_vm2 = vcmp.eq.s32.totalorder %v2527_v60, %v1980_v26 }
  0xea   : > { %v1202_v11 = vadd.f32 %v1186_v48, %v1139_v4  ;;  %v495_v18 = vsel %vm473_vm1, %v1994_v30, 0.0  ;;  %v1059_v37 = vsel %vm1037_vm13, %v2120_v42, 0.0  ;;  %vm599_vm3 = vcmp.eq.s32.totalorder %v2527_v60, %v1983_v27 }
  0xeb   : > { %v886_v12 = vadd.f32 %v870_v1, %v823_v29  ;;  %v448_v40 = vadd.f32 %v432_v17, %v385_v32  ;;  %vm1100_vm4 = vcmp.eq.s32.totalorder %v2236_v16, %v2094_v3  ;;  %vm1163_vm5 = vcmp.eq.s32.totalorder %v2236_v16, %v2097_v31 }
  0xec   : > { %v1265_v13 = vadd.f32 %v1249_v58, %v1202_v11  ;;  %v558_v43 = vsel %vm536_vm2, %v2005_v38, 0.0  ;;  %vm1226_vm6 = vcmp.eq.s32.totalorder %v2236_v16, %v2106_v35  ;;  %vm662_vm7 = vcmp.eq.s32.totalorder %v2527_v60, %v2010_v39 }
  0xed   : > { %v949_v44 = vadd.f32 %v933_v33, %v886_v12  ;;  %v511_v46 = vadd.f32 %v495_v18, %v448_v40  ;;  %v621_v0 = vsel %vm599_vm3, %v2019_v45, 0.0  ;;  %vm725_vm8 = vcmp.eq.s32.totalorder %v2527_v60, %v2014_v41 }
  0xee   : > { %1304 = vadd.xlane.f32.xlu1 %v1265_v13  ;;  %vm788_vm9 = vcmp.eq.s32.totalorder %v2527_v60, %v2027_v49  ;;  %v2577_v50 = vadd.s32 64, %v1942_v6  ;;  %v1122_v9 = vsel %vm1100_vm4, %v2130_v47, 0.0  ;;  %v1185_v16 = vsel %vm1163_vm5, %v2138_v53, 0.0 }
  0xef   : > { %v1012_v55 = vadd.f32 %v996_v36, %v949_v44  ;;  %v574_v48 = vadd.f32 %v558_v43, %v511_v46  ;;  %v1248_v58 = vsel %vm1226_vm6, %v2141_v54, 0.0  ;;  %v684_v57 = vsel %vm662_vm7, %v2030_v51, 0.0 }
  0xf0   : > { %v2584_v8 = vadd.s32 88, %v1942_v6  ;;  %v2587_v61 = vadd.s32 80, %v1942_v6  ;;  %v747_v2 = vsel %vm725_vm8, %v2041_v56, 0.0  ;;  %v810_v4 = vsel %vm788_vm9, %v2055_v63, 0.0 }
  0xf1   : > { %v1075_v62 = vadd.f32 %v1059_v37, %v1012_v55  ;;  %v637_v1 = vadd.f32 %v621_v0, %v574_v48  ;;  %vm851_vm10 = vcmp.eq.s32.totalorder %v2527_v60, %v2035_v52  ;;  %vm283_vm11 = vcmp.eq.s32.totalorder %v2577_v50, %v1962_v20 }
  0xf2   : > { %vm346_vm12 = vcmp.eq.s32.totalorder %v2577_v50, %v1968_v22  ;;  %vm409_vm13 = vcmp.eq.s32.totalorder %v2577_v50, %v1974_v24  ;;  %vm914_vm14 = vcmp.eq.s32.totalorder %v2527_v60, %v2049_v59  ;;  %v305_v17 = vsel %vm283_vm11, %v1959_v19, 0.0 }
  0xf3   : > { %v1138_v10 = vadd.f32 %v1122_v9, %v1075_v62  ;;  %v700_v14 = vadd.f32 %v684_v57, %v637_v1  ;;  %vm977_vm15 = vcmp.eq.s32.totalorder %v2527_v60, %v2068_v7  ;;  %v368_v29 = vsel %vm346_vm12, %v1965_v21, 0.0 }
  0xf4   : > { %v431_v32 = vsel %vm409_vm13, %v1971_v23, 0.0  ;;  %vm472_vm0 = vcmp.eq.s32.totalorder %v2577_v50, %v1977_v25  ;;  %v384_v36 = vadd.f32 %v368_v29, %v305_v17  ;;  %vm535_vm1 = vcmp.eq.s32.totalorder %v2577_v50, %v1980_v26 }
  0xf5   : > { %v1201_v11 = vadd.f32 %v1185_v16, %v1138_v10  ;;  %v763_v33 = vadd.f32 %v747_v2, %v700_v14  ;;  %v873_v19 = vsel %vm851_vm10, %v2063_v5, 0.0  ;;  %v936_v18 = vsel %vm914_vm14, %v2087_v28, 0.0  ;;  %v2676_v14 = vld [vmem:[%s1884_s20 + $0x2] ss:$0 sm:$0xff] }
  0xf6   : > { %vm1040_vm2 = vcmp.eq.s32.totalorder %v2527_v60, %v2082_v15  ;;  %v494_v21 = vsel %vm472_vm0, %v1994_v30, 0.0  ;;  %v447_v37 = vadd.f32 %v431_v32, %v384_v36  ;;  %vm598_vm3 = vcmp.eq.s32.totalorder %v2577_v50, %v1983_v27 }
  0xf7   : > { %v1264_v23 = vadd.f32 %v1248_v58, %v1201_v11  ;;  %v826_v12 = vadd.f32 %v810_v4, %v763_v33  ;;  %vm1103_vm4 = vcmp.eq.s32.totalorder %v2527_v60, %v2094_v3  ;;  %vm1166_vm5 = vcmp.eq.s32.totalorder %v2527_v60, %v2097_v31  ;;  %v2684_v11 = vld [vmem:[%s1884_s20 + $0x3] ss:$0 sm:$0xff] }
  0xf8   : > { %vm1229_vm6 = vcmp.eq.s32.totalorder %v2527_v60, %v2106_v35  ;;  %v557_v40 = vsel %vm535_vm1, %v2005_v38, 0.0  ;;  %v510_v30 = vadd.f32 %v494_v21, %v447_v37  ;;  %vm661_vm7 = vcmp.eq.s32.totalorder %v2577_v50, %v2010_v39  ;;  %v2666_v60 = vld [vmem:[%s1884_s20] ss:$0 sm:$0xff] }
  0xf9   : > { %1302 = vadd.xlane.f32.xlu0 %v1264_v23  ;;  %v889_v13 = vadd.f32 %v873_v19, %v826_v12  ;;  %vm724_vm8 = vcmp.eq.s32.totalorder %v2577_v50, %v2014_v41  ;;  %v999_v43 = vsel %vm977_vm15, %v2103_v34, 0.0  ;;  %v620_v44 = vsel %vm598_vm3, %v2019_v45, 0.0  ;;  %v2701_v23 = vld [vmem:[%s1884_s20 + $0x4] ss:$0 sm:$0xff] }
  0xfa   : > { %vm787_vm9 = vcmp.eq.s32.totalorder %v2577_v50, %v2027_v49  ;;  %vm850_vm10 = vcmp.eq.s32.totalorder %v2577_v50, %v2035_v52  ;;  %v1062_v46 = vsel %vm1040_vm2, %v2120_v42, 0.0  ;;  %v1125_v0 = vsel %vm1103_vm4, %v2130_v47, 0.0 }
  0xfb   : > { %v952_v38 = vadd.f32 %v936_v18, %v889_v13  ;;  %v573_v55 = vadd.f32 %v557_v40, %v510_v30  ;;  %v1188_v45 = vsel %vm1166_vm5, %v2138_v53, 0.0  ;;  %v1251_v9 = vsel %vm1229_vm6, %v2141_v54, 0.0  ;;  %v2711_v30 = vld [vmem:[%s1884_s20 + $0x5] ss:$0 sm:$0xff] }
  0xfc   : > { %v683_v16 = vsel %vm661_vm7, %v2030_v51, 0.0  ;;  %v746_v48 = vsel %vm724_vm8, %v2041_v56, 0.0  ;;  %v809_v62 = vsel %vm787_vm9, %v2055_v63, 0.0  ;;  %v872_v1 = vsel %vm850_vm10, %v2063_v5, 0.0  ;;  %v2670_v5 = vld [vmem:[%s1884_s20 + $0x1] ss:$0 sm:$0xff] }
  0xfd   : > { %v1015_v58 = vadd.f32 %v999_v43, %v952_v38  ;;  %v636_v57 = vadd.f32 %v620_v44, %v573_v55  ;;  %vm286_vm11 = vcmp.eq.s32.totalorder %v2584_v8, %v1962_v20  ;;  %vm349_vm12 = vcmp.eq.s32.totalorder %v2584_v8, %v1968_v22 }
  0xfe   : > { %vm412_vm13 = vcmp.eq.s32.totalorder %v2584_v8, %v1974_v24  ;;  %vm475_vm14 = vcmp.eq.s32.totalorder %v2584_v8, %v1977_v25  ;;  %v308_v2 = vsel %vm286_vm11, %v2666_v60, 0.0  ;;  %v371_v4 = vsel %vm349_vm12, %v2670_v5, 0.0 }
  0xff   : > { %v1078_v51 = vadd.f32 %v1062_v46, %v1015_v58  ;;  %v699_v56 = vadd.f32 %v683_v16, %v636_v57  ;;  %vm913_vm15 = vcmp.eq.s32.totalorder %v2577_v50, %v2049_v59  ;;  %v387_v10 = vadd.f32 %v371_v4, %v308_v2  ;;  %v2743_v57 = vld [vmem:[%s1884_s20 + $0x7] ss:$0 sm:$0xff] }
 0x100   : > { %v434_v17 = vsel %vm412_vm13, %v2676_v14, 0.0  ;;  %vm538_vm0 = vcmp.eq.s32.totalorder %v2584_v8, %v1980_v26  ;;  %vm976_vm1 = vcmp.eq.s32.totalorder %v2577_v50, %v2068_v7  ;;  %v497_v33 = vsel %vm475_vm14, %v2684_v11, 0.0 }
 0x101   : > { %v1141_v29 = vadd.f32 %v1125_v0, %v1078_v51  ;;  %v762_v32 = vadd.f32 %v746_v48, %v699_v56  ;;  %vm1039_vm2 = vcmp.eq.s32.totalorder %v2577_v50, %v2082_v15  ;;  %vm1102_vm3 = vcmp.eq.s32.totalorder %v2577_v50, %v2094_v3 }
 0x102   : > { %v450_v36 = vadd.f32 %v434_v17, %v387_v10  ;;  %vm601_vm4 = vcmp.eq.s32.totalorder %v2584_v8, %v1983_v27  ;;  %v935_v21 = vsel %vm913_vm15, %v2087_v28, 0.0  ;;  %v560_v12 = vsel %vm538_vm0, %v2701_v23, 0.0 }
 0x103   : > { %v1204_v19 = vadd.f32 %v1188_v45, %v1141_v29  ;;  %v825_v18 = vadd.f32 %v809_v62, %v762_v32  ;;  %vm1165_vm5 = vcmp.eq.s32.totalorder %v2577_v50, %v2097_v31  ;;  %vm1228_vm6 = vcmp.eq.s32.totalorder %v2577_v50, %v2106_v35  ;;  %v2767_v32 = vld [vmem:[%s1884_s20 + $0x9] ss:$0 sm:$0xff] }
 0x104   : > { %v513_v37 = vadd.f32 %v497_v33, %v450_v36  ;;  %vm664_vm7 = vcmp.eq.s32.totalorder %v2584_v8, %v2010_v39  ;;  %v623_v43 = vsel %vm601_vm4, %v2711_v30, 0.0  ;;  %vm727_vm8 = vcmp.eq.s32.totalorder %v2584_v8, %v2014_v41 }
 0x105   : > { %v1267_v40 = vadd.f32 %v1251_v9, %v1204_v19  ;;  %v888_v13 = vadd.f32 %v872_v1, %v825_v18  ;;  %v998_v44 = vsel %vm976_vm1, %v2103_v34, 0.0  ;;  %v1061_v38 = vsel %vm1039_vm2, %v2120_v42, 0.0  ;;  %v2735_v9 = vld [vmem:[%s1884_s20 + $0x6] ss:$0 sm:$0xff] }
 0x106   : > { %v576_v46 = vadd.f32 %v560_v12, %v513_v37  ;;  %vm790_vm9 = vcmp.eq.s32.totalorder %v2584_v8, %v2027_v49  ;;  %v1124_v55 = vsel %vm1102_vm3, %v2130_v47, 0.0  ;;  %v1187_v45 = vsel %vm1165_vm5, %v2138_v53, 0.0 }
 0x107   : > { %1308 = vadd.xlane.f32.xlu1 %v1267_v40  ;;  %v951_v0 = vadd.f32 %v935_v21, %v888_v13  ;;  %v686_v16 = vsel %vm664_vm7, %v2735_v9, 0.0  ;;  %v1250_v48 = vsel %vm1228_vm6, %v2141_v54, 0.0  ;;  %v749_v62 = vsel %vm727_vm8, %v2743_v57, 0.0 }
 0x108   : > { %v639_v58 = vadd.f32 %v623_v43, %v576_v46  ;;  %vm853_vm10 = vcmp.eq.s32.totalorder %v2584_v8, %v2035_v52  ;;  %v812_v51 = vsel %vm790_vm9, %v2055_v63, 0.0  ;;  %vm916_vm11 = vcmp.eq.s32.totalorder %v2584_v8, %v2049_v59 }
 0x109   : > { %v1014_v1 = vadd.f32 %v998_v44, %v951_v0  ;;  %vm285_vm12 = vcmp.eq.s32.totalorder %v2587_v61, %v1962_v20  ;;  %vm348_vm13 = vcmp.eq.s32.totalorder %v2587_v61, %v1968_v22  ;;  %vm411_vm14 = vcmp.eq.s32.totalorder %v2587_v61, %v1974_v24 }
 0x10a   : > { %v702_v50 = vadd.f32 %v686_v16, %v639_v58  ;;  %v307_v56 = vsel %vm285_vm12, %v2666_v60, 0.0  ;;  %v370_v4 = vsel %vm348_vm13, %v2670_v5, 0.0  ;;  %v433_v63 = vsel %vm411_vm14, %v2676_v14, 0.0 }
 0x10b   : > { %v1077_v2 = vadd.f32 %v1061_v38, %v1014_v1  ;;  %vm474_vm15 = vcmp.eq.s32.totalorder %v2587_v61, %v1977_v25  ;;  %vm979_vm0 = vcmp.eq.s32.totalorder %v2584_v8, %v2068_v7  ;;  %v386_v17 = vadd.f32 %v370_v4, %v307_v56  ;;  %v2815_v1 = vld [vmem:[%s1884_s20 + $0x8] ss:$0 sm:$0xff]  ;;  %v2837_v4 = vld [vmem:[%s1884_s20 + $0xa] ss:$0 sm:$0xff] }
 0x10c   : > { %v765_v10 = vadd.f32 %v749_v62, %v702_v50  ;;  %vm537_vm1 = vcmp.eq.s32.totalorder %v2587_v61, %v1980_v26  ;;  %v875_v33 = vsel %vm853_vm10, %v2767_v32, 0.0  ;;  %v938_v36 = vsel %vm916_vm11, %v2087_v28, 0.0 }
 0x10d   : > { %v1140_v29 = vadd.f32 %v1124_v55, %v1077_v2  ;;  %v496_v19 = vsel %vm474_vm15, %v2684_v11, 0.0  ;;  %vm1042_vm2 = vcmp.eq.s32.totalorder %v2584_v8, %v2082_v15  ;;  %v449_v21 = vadd.f32 %v433_v63, %v386_v17 }
 0x10e   : > { %v828_v18 = vadd.f32 %v812_v51, %v765_v10  ;;  %vm600_vm3 = vcmp.eq.s32.totalorder %v2587_v61, %v1983_v27  ;;  %v1001_v37 = vsel %vm979_vm0, %v2103_v34, 0.0  ;;  %vm1105_vm4 = vcmp.eq.s32.totalorder %v2584_v8, %v2094_v3 }
 0x10f   : > { %v1203_v12 = vadd.f32 %v1187_v45, %v1140_v29  ;;  %v559_v40 = vsel %vm537_vm1, %v2701_v23, 0.0  ;;  %vm1168_vm5 = vcmp.eq.s32.totalorder %v2584_v8, %v2097_v31  ;;  %v512_v28 = vadd.f32 %v496_v19, %v449_v21 }
 0x110   : > { %v891_v13 = vadd.f32 %v875_v33, %v828_v18  ;;  %vm663_vm6 = vcmp.eq.s32.totalorder %v2587_v61, %v2010_v39  ;;  %vm1231_vm7 = vcmp.eq.s32.totalorder %v2584_v8, %v2106_v35  ;;  %v622_v34 = vsel %vm600_vm3, %v2711_v30, 0.0 }
 0x111   : > { %v1266_v43 = vadd.f32 %v1250_v48, %v1203_v12  ;;  %vm726_vm8 = vcmp.eq.s32.totalorder %v2587_v61, %v2014_v41  ;;  %v575_v38 = vadd.f32 %v559_v40, %v512_v28  ;;  %vm789_vm9 = vcmp.eq.s32.totalorder %v2587_v61, %v2027_v49 }
 0x112   : > { %v954_v44 = vadd.f32 %v938_v36, %v891_v13  ;;  %vm852_vm10 = vcmp.eq.s32.totalorder %v2587_v61, %v2035_v52  ;;  %v1064_v46 = vsel %vm1042_vm2, %v2120_v42, 0.0  ;;  %v1127_v0 = vsel %vm1105_vm4, %v2130_v47, 0.0  ;;  %v2844_v36 = vld [vmem:[%s1884_s20 + $0xb] ss:$0 sm:$0xff] }
 0x113   : > { %1306 = vadd.xlane.f32.xlu0 %v1266_v43  ;;  %v685_v55 = vsel %vm663_vm6, %v2735_v9, 0.0  ;;  %v1190_v16 = vsel %vm1168_vm5, %v2138_v53, 0.0  ;;  %v1253_v48 = vsel %vm1231_vm7, %v2141_v54, 0.0  ;;  %v638_v58 = vadd.f32 %v622_v34, %v575_v38  ;;  %v2868_v34 = vld [vmem:[%s1884_s20 + $0xc] ss:$0 sm:$0xff] }
 0x114   : > { %v1017_v45 = vadd.f32 %v1001_v37, %v954_v44  ;;  %v748_v62 = vsel %vm726_vm8, %v2743_v57, 0.0  ;;  %v811_v42 = vsel %vm789_vm9, %v2815_v1, 0.0  ;;  %v874_v47 = vsel %vm852_vm10, %v2767_v32, 0.0 }
 0x115   : > { %v2820_v51 = vadd.s32 104, %v1942_v6  ;;  %v701_v56 = vadd.f32 %v685_v55, %v638_v58  ;;  %vm915_vm11 = vcmp.eq.s32.totalorder %v2587_v61, %v2049_v59  ;;  %vm978_vm12 = vcmp.eq.s32.totalorder %v2587_v61, %v2068_v7  ;;  %v2882_v55 = vld [vmem:[%s1884_s20 + $0xe] ss:$0 sm:$0xff]  ;;  %v2888_v58 = vld [vmem:[%s1884_s20 + $0xf] ss:$0 sm:$0xff] }
 0x116   : > { %v1080_v50 = vadd.f32 %v1064_v46, %v1017_v45  ;;  %v937_v63 = vsel %vm915_vm11, %v2837_v4, 0.0  ;;  %v1000_v19 = vsel %vm978_vm12, %v2844_v36, 0.0  ;;  %vm1041_vm2 = vcmp.eq.s32.totalorder %v2587_v61, %v2082_v15  ;;  %v2875_v46 = vld [vmem:[%s1884_s20 + $0xd] ss:$0 sm:$0xff] }
 0x117   : > { %vm288_vm13 = vcmp.eq.s32.totalorder %v2820_v51, %v1962_v20  ;;  %vm351_vm14 = vcmp.eq.s32.totalorder %v2820_v51, %v1968_v22  ;;  %vm414_vm15 = vcmp.eq.s32.totalorder %v2820_v51, %v1974_v24  ;;  %vm477_vm0 = vcmp.eq.s32.totalorder %v2820_v51, %v1977_v25 }
 0x118   : > { %v1143_v53 = vadd.f32 %v1127_v0, %v1080_v50  ;;  %v764_v54 = vadd.f32 %v748_v62, %v701_v56  ;;  %v310_v8 = vsel %vm288_vm13, %v2666_v60, 0.0  ;;  %v373_v2 = vsel %vm351_vm14, %v2670_v5, 0.0 }
 0x119   : > { %v389_v10 = vadd.f32 %v373_v2, %v310_v8  ;;  %v436_v17 = vsel %vm414_vm15, %v2676_v14, 0.0  ;;  %vm540_vm1 = vcmp.eq.s32.totalorder %v2820_v51, %v1980_v26  ;;  %v499_v18 = vsel %vm477_vm0, %v2684_v11, 0.0 }
 0x11a   : > { %v1206_v29 = vadd.f32 %v1190_v16, %v1143_v53  ;;  %v827_v33 = vadd.f32 %v811_v42, %v764_v54  ;;  %vm1104_vm3 = vcmp.eq.s32.totalorder %v2587_v61, %v2094_v3  ;;  %vm603_vm4 = vcmp.eq.s32.totalorder %v2820_v51, %v1983_v27 }
 0x11b   : > { %v452_v21 = vadd.f32 %v436_v17, %v389_v10  ;;  %vm1167_vm5 = vcmp.eq.s32.totalorder %v2587_v61, %v2097_v31  ;;  %v562_v40 = vsel %vm540_vm1, %v2701_v23, 0.0  ;;  %vm1230_vm6 = vcmp.eq.s32.totalorder %v2587_v61, %v2106_v35 }
 0x11c   : > { %v1269_v12 = vadd.f32 %v1253_v48, %v1206_v29  ;;  %v890_v37 = vadd.f32 %v874_v47, %v827_v33  ;;  %vm666_vm7 = vcmp.eq.s32.totalorder %v2820_v51, %v2010_v39  ;;  %v2865_v28 = vadd.s32 96, %v1942_v6 }
 0x11d   : > { %v515_v13 = vadd.f32 %v499_v18, %v452_v21  ;;  %v1063_v44 = vsel %vm1041_vm2, %v2868_v34, 0.0  ;;  %v625_v38 = vsel %vm603_vm4, %v2711_v30, 0.0  ;;  %vm729_vm8 = vcmp.eq.s32.totalorder %v2820_v51, %v2014_v41 }
 0x11e   : > { %1312 = vadd.xlane.f32.xlu1 %v1269_v12  ;;  %v953_v43 = vadd.f32 %v937_v63, %v890_v37  ;;  %v1126_v0 = vsel %vm1104_vm3, %v2875_v46, 0.0  ;;  %v1189_v45 = vsel %vm1167_vm5, %v2882_v55, 0.0  ;;  %vm792_vm9 = vcmp.eq.s32.totalorder %v2820_v51, %v2027_v49 }
 0x11f   : > { %v578_v16 = vadd.f32 %v562_v40, %v515_v13  ;;  %v1252_v62 = vsel %vm1230_vm6, %v2888_v58, 0.0  ;;  %v688_v42 = vsel %vm666_vm7, %v2735_v9, 0.0  ;;  %v2899_v47 = vadd.s32 120, %v1942_v6 }
 0x120   : > { %v1016_v48 = vadd.f32 %v1000_v19, %v953_v43  ;;  %v751_v56 = vsel %vm729_vm8, %v2743_v57, 0.0  ;;  %vm855_vm10 = vcmp.eq.s32.totalorder %v2820_v51, %v2035_v52  ;;  %vm287_vm11 = vcmp.eq.s32.totalorder %v2865_v28, %v1962_v20 }
 0x121   : > { %v641_v50 = vadd.f32 %v625_v38, %v578_v16  ;;  %v814_v61 = vsel %vm792_vm9, %v2815_v1, 0.0  ;;  %vm918_vm12 = vcmp.eq.s32.totalorder %v2820_v51, %v2049_v59  ;;  %v309_v54 = vsel %vm287_vm11, %v2666_v60, 0.0 }
 0x122   : > { %v1079_v53 = vadd.f32 %v1063_v44, %v1016_v48  ;;  %vm350_vm13 = vcmp.eq.s32.totalorder %v2865_v28, %v1968_v22  ;;  %vm413_vm14 = vcmp.eq.s32.totalorder %v2865_v28, %v1974_v24  ;;  %vm476_vm15 = vcmp.eq.s32.totalorder %v2865_v28, %v1977_v25 }
 0x123   : > { %v704_v8 = vadd.f32 %v688_v42, %v641_v50  ;;  %v877_v63 = vsel %vm855_vm10, %v2767_v32, 0.0  ;;  %v372_v10 = vsel %vm350_vm13, %v2670_v5, 0.0  ;;  %v435_v17 = vsel %vm413_vm14, %v2676_v14, 0.0 }
 0x124   : > { %v1142_v2 = vadd.f32 %v1126_v0, %v1079_v53  ;;  %v940_v33 = vsel %vm918_vm12, %v2837_v4, 0.0  ;;  %v388_v19 = vadd.f32 %v372_v10, %v309_v54  ;;  %vm539_vm0 = vcmp.eq.s32.totalorder %v2865_v28, %v1980_v26 }
 0x125   : > { %v767_v29 = vadd.f32 %v751_v56, %v704_v8  ;;  %vm981_vm1 = vcmp.eq.s32.totalorder %v2820_v51, %v2068_v7  ;;  %vm1044_vm2 = vcmp.eq.s32.totalorder %v2820_v51, %v2082_v15  ;;  %v498_v21 = vsel %vm476_vm15, %v2684_v11, 0.0 }
 0x126   : > { %v1205_v18 = vadd.f32 %v1189_v45, %v1142_v2  ;;  %vm1107_vm3 = vcmp.eq.s32.totalorder %v2820_v51, %v2094_v3  ;;  %v451_v37 = vadd.f32 %v435_v17, %v388_v19  ;;  %vm602_vm4 = vcmp.eq.s32.totalorder %v2865_v28, %v1983_v27 }
 0x127   : > { %v830_v12 = vadd.f32 %v814_v61, %v767_v29  ;;  %vm1170_vm5 = vcmp.eq.s32.totalorder %v2820_v51, %v2097_v31  ;;  %vm1233_vm6 = vcmp.eq.s32.totalorder %v2820_v51, %v2106_v35  ;;  %v561_v13 = vsel %vm539_vm0, %v2701_v23, 0.0 }
 0x128   : > { %v1268_v40 = vadd.f32 %v1252_v62, %v1205_v18  ;;  %v514_v44 = vadd.f32 %v498_v21, %v451_v37  ;;  %vm665_vm7 = vcmp.eq.s32.totalorder %v2865_v28, %v2010_v39  ;;  %vm728_vm8 = vcmp.eq.s32.totalorder %v2865_v28, %v2014_v41 }
 0x129   : > { %v893_v43 = vadd.f32 %v877_v63, %v830_v12  ;;  %v1003_v38 = vsel %vm981_vm1, %v2844_v36, 0.0  ;;  %v624_v0 = vsel %vm602_vm4, %v2711_v30, 0.0  ;;  %vm791_vm9 = vcmp.eq.s32.totalorder %v2865_v28, %v2027_v49 }
 0x12a   : > { %1310 = vadd.xlane.f32.xlu0 %v1268_v40  ;;  %v2948_v45 = vadd.s32 112, %v1942_v6  ;;  %v1066_v48 = vsel %vm1044_vm2, %v2868_v34, 0.0  ;;  %v1129_v62 = vsel %vm1107_vm3, %v2875_v46, 0.0  ;;  %v577_v42 = vadd.f32 %v561_v13, %v514_v44 }
 0x12b   : > { %v956_v16 = vadd.f32 %v940_v33, %v893_v43  ;;  %v1192_v50 = vsel %vm1170_vm5, %v2882_v55, 0.0  ;;  %v1255_v6 = vsel %vm1233_vm6, %v2888_v58, 0.0  ;;  %v687_v56 = vsel %vm665_vm7, %v2735_v9, 0.0 }
 0x12c   : > { %v750_v53 = vsel %vm728_vm8, %v2743_v57, 0.0  ;;  %v640_v54 = vadd.f32 %v624_v0, %v577_v42  ;;  %v813_v8 = vsel %vm791_vm9, %v2815_v1, 0.0  ;;  %vm854_vm10 = vcmp.eq.s32.totalorder %v2865_v28, %v2035_v52 }
 0x12d   : > { %v1019_v61 = vadd.f32 %v1003_v38, %v956_v16  ;;  %vm290_vm11 = vcmp.eq.s32.totalorder %v2899_v47, %v1962_v20  ;;  %vm353_vm12 = vcmp.eq.s32.totalorder %v2899_v47, %v1968_v22  ;;  %vm416_vm13 = vcmp.eq.s32.totalorder %v2899_v47, %v1974_v24 }
 0x12e   : > { %vm479_vm14 = vcmp.eq.s32.totalorder %v2899_v47, %v1977_v25  ;;  %v703_v2 = vadd.f32 %v687_v56, %v640_v54  ;;  %v312_v63 = vsel %vm290_vm11, %v2666_v60, 0.0  ;;  %v375_v10 = vsel %vm353_vm12, %v2670_v5, 0.0 }
 0x12f   : > { %v1082_v51 = vadd.f32 %v1066_v48, %v1019_v61  ;;  %v876_v17 = vsel %vm854_vm10, %v2767_v32, 0.0  ;;  %v391_v29 = vadd.f32 %v375_v10, %v312_v63  ;;  %v438_v33 = vsel %vm416_vm13, %v2676_v14, 0.0 }
 0x130   : > { %vm542_vm15 = vcmp.eq.s32.totalorder %v2899_v47, %v1980_v26  ;;  %v766_v18 = vadd.f32 %v750_v53, %v703_v2  ;;  %vm917_vm0 = vcmp.eq.s32.totalorder %v2865_v28, %v2049_v59  ;;  %v501_v21 = vsel %vm479_vm14, %v2684_v11, 0.0 }
 0x131   : > { %v1145_v19 = vadd.f32 %v1129_v62, %v1082_v51  ;;  %vm980_vm1 = vcmp.eq.s32.totalorder %v2865_v28, %v2068_v7  ;;  %vm1043_vm2 = vcmp.eq.s32.totalorder %v2865_v28, %v2082_v15  ;;  %v454_v12 = vadd.f32 %v438_v33, %v391_v29 }
 0x132   : > { %vm605_vm3 = vcmp.eq.s32.totalorder %v2899_v47, %v1983_v27  ;;  %v829_v40 = vadd.f32 %v813_v8, %v766_v18  ;;  %vm1106_vm4 = vcmp.eq.s32.totalorder %v2865_v28, %v2094_v3  ;;  %v564_v13 = vsel %vm542_vm15, %v2701_v23, 0.0 }
 0x133   : > { %v1208_v37 = vadd.f32 %v1192_v50, %v1145_v19  ;;  %v939_v43 = vsel %vm917_vm0, %v2837_v4, 0.0  ;;  %vm1169_vm5 = vcmp.eq.s32.totalorder %v2865_v28, %v2097_v31  ;;  %v517_v44 = vadd.f32 %v501_v21, %v454_v12 }
 0x134   : > { %vm668_vm6 = vcmp.eq.s32.totalorder %v2899_v47, %v2010_v39  ;;  %v892_v0 = vadd.f32 %v876_v17, %v829_v40  ;;  %v627_v16 = vsel %vm605_vm3, %v2711_v30, 0.0  ;;  %vm731_vm7 = vcmp.eq.s32.totalorder %v2899_v47, %v2014_v41 }
 0x135   : > { %v1271_v38 = vadd.f32 %v1255_v6, %v1208_v37  ;;  %v1002_v48 = vsel %vm980_vm1, %v2844_v36, 0.0  ;;  %v580_v62 = vadd.f32 %v564_v13, %v517_v44  ;;  %vm794_vm8 = vcmp.eq.s32.totalorder %v2899_v47, %v2027_v49  ;;  %v1291_v13 = vpop.xlane.xlu0 %1290 }
 0x136   : > { %v955_v42 = vadd.f32 %v939_v43, %v892_v0  ;;  %v1065_v50 = vsel %vm1043_vm2, %v2868_v34, 0.0  ;;  %v1128_v6 = vsel %vm1106_vm4, %v2875_v46, 0.0  ;;  %v690_v56 = vsel %vm668_vm6, %v2735_v9, 0.0 }
 0x137   : > { %1316 = vadd.xlane.f32.xlu1 %v1271_v38  ;;  %v1191_v53 = vsel %vm1169_vm5, %v2882_v55, 0.0  ;;  %vm1232_vm9 = vcmp.eq.s32.totalorder %v2865_v28, %v2106_v35  ;;  %v643_v61 = vadd.f32 %v627_v16, %v580_v62  ;;  %v753_v54 = vsel %vm731_vm7, %v2743_v57, 0.0 }
 0x138   : > { %v1018_v8 = vadd.f32 %v1002_v48, %v955_v42  ;;  %v816_v51 = vsel %vm794_vm8, %v2815_v1, 0.0  ;;  %vm857_vm10 = vcmp.eq.s32.totalorder %v2899_v47, %v2035_v52  ;;  %vm289_vm11 = vcmp.eq.s32.totalorder %v2948_v45, %v1962_v20 }
 0x139   : > { %v706_v2 = vadd.f32 %v690_v56, %v643_v61  ;;  %v311_v63 = vsel %vm289_vm11, %v2666_v60, 0.0  ;;  %vm352_vm12 = vcmp.eq.s32.totalorder %v2948_v45, %v1968_v22  ;;  %vm415_vm13 = vcmp.eq.s32.totalorder %v2948_v45, %v1974_v24  ;;  %v1277_v61 = vld [vmem:[%s1899_s5 + $0x18] sm:$0xff] }
 0x13a   : > { %v1081_v10 = vadd.f32 %v1065_v50, %v1018_v8  ;;  %v374_v17 = vsel %vm352_vm12, %v2670_v5, 0.0  ;;  %v437_v29 = vsel %vm415_vm13, %v2676_v14, 0.0  ;;  %vm478_vm14 = vcmp.eq.s32.totalorder %v2948_v45, %v1977_v25 }
 0x13b   : > { %v769_v33 = vadd.f32 %v753_v54, %v706_v2  ;;  %vm920_vm15 = vcmp.eq.s32.totalorder %v2899_v47, %v2049_v59  ;;  %v390_v20 = vadd.f32 %v374_v17, %v311_v63  ;;  %vm541_vm0 = vcmp.eq.s32.totalorder %v2948_v45, %v1980_v26  ;;  %v1275_v17 = vld [vmem:[%s1899_s5 + $0x8] sm:$0xff] }
 0x13c   : > { %v1144_v22 = vadd.f32 %v1128_v6, %v1081_v10  ;;  %v1254_v24 = vsel %vm1232_vm9, %v2888_v58, 0.0  ;;  %v879_v60 = vsel %vm857_vm10, %v2767_v32, 0.0  ;;  %v500_v25 = vsel %vm478_vm14, %v2684_v11, 0.0 }
 0x13d   : > { %v832_v5 = vadd.f32 %v816_v51, %v769_v33  ;;  %vm983_vm1 = vcmp.eq.s32.totalorder %v2899_v47, %v2068_v7  ;;  %v453_v14 = vadd.f32 %v437_v29, %v390_v20  ;;  %vm604_vm2 = vcmp.eq.s32.totalorder %v2948_v45, %v1983_v27  ;;  %v1279_v33 = vld [vmem:[%s1899_s5 + $0x28] sm:$0xff] }
 0x13e   : > { %v1207_v26 = vadd.f32 %v1191_v53, %v1144_v22  ;;  %v942_v28 = vsel %vm920_vm15, %v2837_v4, 0.0  ;;  %vm1046_vm3 = vcmp.eq.s32.totalorder %v2899_v47, %v2082_v15  ;;  %v563_v19 = vsel %vm541_vm0, %v2701_v23, 0.0  ;;  %v1274_v23 = vld [vmem:[%s1899_s5] sm:$0xff]  ;;  %v1295_v0 = vpop.xlane.xlu1 %1294  ;;  %v1281_v22 = vld [vmem:[%s1899_s5 + $0x38] sm:$0xff] }
 0x13f   : > { %v895_v18 = vadd.f32 %v879_v60, %v832_v5  ;;  %vm1109_vm4 = vcmp.eq.s32.totalorder %v2899_v47, %v2094_v3  ;;  %v516_v11 = vadd.f32 %v500_v25, %v453_v14  ;;  %vm667_vm5 = vcmp.eq.s32.totalorder %v2948_v45, %v2010_v39  ;;  %v1276_v39 = vld [vmem:[%s1899_s5 + $0x10] sm:$0xff] }
 0x140   : > { %v1270_v21 = vadd.f32 %v1254_v24, %v1207_v26  ;;  %v1005_v27 = vsel %vm983_vm1, %v2844_v36, 0.0  ;;  %v626_v12 = vsel %vm604_vm2, %v2711_v30, 0.0  ;;  %vm730_vm6 = vcmp.eq.s32.totalorder %v2948_v45, %v2014_v41  ;;  %v1280_v25 = vld [vmem:[%s1899_s5 + $0x30] sm:$0xff]  ;;  %v1283_v26 = vld [vmem:[%s1899_s5 + $0x48] sm:$0xff] }
 0x141   : > { %v958_v37 = vadd.f32 %v942_v28, %v895_v18  ;;  %v579_v40 = vadd.f32 %v563_v19, %v516_v11  ;;  %v1068_v43 = vsel %vm1046_vm3, %v2868_v34, 0.0  ;;  %v1131_v44 = vsel %vm1109_vm4, %v2875_v46, 0.0  ;;  %v1282_v18 = vld [vmem:[%s1899_s5 + $0x40] sm:$0xff] }
 0x142   : > { %1314 = vadd.xlane.f32.xlu0 %v1270_v21  ;;  %v689_v38 = vsel %vm667_vm5, %v2735_v9, 0.0  ;;  %vm1172_vm7 = vcmp.eq.s32.totalorder %v2899_v47, %v2097_v31  ;;  %vm793_vm8 = vcmp.eq.s32.totalorder %v2948_v45, %v2027_v49  ;;  %vm1235_vm9 = vcmp.eq.s32.totalorder %v2899_v47, %v2106_v35 }
 0x143   : > { %v1021_v16 = vadd.f32 %v1005_v27, %v958_v37  ;;  %v642_v30 = vadd.f32 %v626_v12, %v579_v40  ;;  %v752_v41 = vsel %vm730_vm6, %v2743_v57, 0.0  ;;  %vm1338_vm10 = vcmask 7168   ;;  %v1285_v27 = vld [vmem:[%s1899_s5 + $0x58] sm:$0xff]  ;;  %v1284_v40 = vld [vmem:[%s1899_s5 + $0x50] sm:$0xff] }
 0x144   : > { %v1322_v48 = vadd.f32 %v1291_v13, %v1274_v23  ;;  %vm856_vm11 = vcmp.eq.s32.totalorder %v2948_v45, %v2035_v52  ;;  %v1324_v42 = vadd.f32 %v1295_v0, %v1276_v39  ;;  %v1194_v50 = vsel %vm1172_vm7, %v2882_v55, 0.0  ;;  %v1286_v39 = vld [vmem:[%s1899_s5 + $0x60] sm:$0xff] }
 0x145   : > { %v1084_v9 = vadd.f32 %v1068_v43, %v1021_v16  ;;  %v705_v62 = vadd.f32 %v689_v38, %v642_v30  ;;  %v815_v6 = vsel %vm793_vm8, %v2815_v1, 0.0  ;;  %vm919_vm12 = vcmp.eq.s32.totalorder %v2948_v45, %v2049_v59  ;;  %v1287_v43 = vld [vmem:[%s1899_s5 + $0x68] sm:$0xff]  ;;  %v1289_v30 = vld [vmem:[%s1899_s5 + $0x78] sm:$0xff] }
 0x146   : > { %1339 = vst.msk [vmem:[%s1899_s5] sm:$0xff] %vm1338_vm10, %v1322_v48  ;;  %1341 = vst.msk [vmem:[%s1899_s5 + $0x10] sm:$0xff] %vm1338_vm10, %v1324_v42  ;;  %v1257_v57 = vsel %vm1235_vm9, %v2888_v58, 0.0  ;;  %v878_v47 = vsel %vm856_vm11, %v2767_v32, 0.0  ;;  %vm982_vm13 = vcmp.eq.s32.totalorder %v2948_v45, %v2068_v7  ;;  %v941_v1 = vsel %vm919_vm12, %v2837_v4, 0.0 }
 0x147   : > { %v1147_v49 = vadd.f32 %v1131_v44, %v1084_v9  ;;  %v768_v56 = vadd.f32 %v752_v41, %v705_v62  ;;  %vm1045_vm14 = vcmp.eq.s32.totalorder %v2948_v45, %v2082_v15  ;;  %v1004_v59 = vsel %vm982_vm13, %v2844_v36, 0.0  ;;  %v1288_v9 = vld [vmem:[%s1899_s5 + $0x70] sm:$0xff] }
 0x148   : > { %vm1108_vm15 = vcmp.eq.s32.totalorder %v2948_v45, %v2094_v3  ;;  %v1067_v7 = vsel %vm1045_vm14, %v2868_v34, 0.0  ;;  %vm1171_vm0 = vcmp.eq.s32.totalorder %v2948_v45, %v2097_v31  ;;  %vm1234_vm1 = vcmp.eq.s32.totalorder %v2948_v45, %v2106_v35 }
 0x149   : > { %v1210_v53 = vadd.f32 %v1194_v50, %v1147_v49  ;;  %v831_v52 = vadd.f32 %v815_v6, %v768_v56  ;;  %v1130_v15 = vsel %vm1108_vm15, %v2875_v46, 0.0  ;;  %v1193_v3 = vsel %vm1171_vm0, %v2882_v55, 0.0 }
 0x14a   : > { %v1256_v34 = vsel %vm1234_vm1, %v2888_v58, 0.0  ;;  %v1278_v58 = vld [vmem:[%s1899_s5 + $0x20] sm:$0xff] }
 0x14b   : > { %v1273_v54 = vadd.f32 %v1257_v57, %v1210_v53  ;;  %v894_v8 = vadd.f32 %v878_v47, %v831_v52 }
 0x14d   : > { %v1297_v51 = vpop.xlane.xlu1 %1296  ;;  %1320 = vadd.xlane.f32.xlu1 %v1273_v54  ;;  %v957_v32 = vadd.f32 %v941_v1, %v894_v8 }
 0x14e   : > { %v1325_v2 = vadd.f32 %v1297_v51, %v1277_v61 }
 0x14f   : > { %v1020_v4 = vadd.f32 %v1004_v59, %v957_v32 }
 0x150   : > { %1342 = vst.msk [vmem:[%s1899_s5 + $0x18] sm:$0xff] %vm1338_vm10, %v1325_v2 }
 0x151   : > { %v1083_v36 = vadd.f32 %v1067_v7, %v1020_v4 }
 0x153   : > { %v1146_v63 = vadd.f32 %v1130_v15, %v1083_v36 }
 0x155   : > { %v1209_v10 = vadd.f32 %v1193_v3, %v1146_v63 }
 0x157   : > { %v1272_v31 = vadd.f32 %v1256_v34, %v1209_v10 }
 0x158   : > { %v1293_v29 = vpop.xlane.xlu0 %1292 }
 0x159   : > { %v1323_v46 = vadd.f32 %v1293_v29, %v1275_v17  ;;  %1318 = vadd.xlane.f32.xlu0 %v1272_v31 }
 0x15b   : > { %1340 = vst.msk [vmem:[%s1899_s5 + $0x8] sm:$0xff] %vm1338_vm10, %v1323_v46 }
 0x163   : > { %v1301_v35 = vpop.xlane.xlu1 %1300 }
 0x164   : > { %v1327_v55 = vadd.f32 %v1301_v35, %v1279_v33 }
 0x166   : > { %1344 = vst.msk [vmem:[%s1899_s5 + $0x28] sm:$0xff] %vm1338_vm10, %v1327_v55 }
 0x170   : > { %v1299_v45 = vpop.xlane.xlu0 %1298 }
 0x171   : > { %v1326_v20 = vadd.f32 %v1299_v45, %v1278_v58 }
 0x173   : > { %1343 = vst.msk [vmem:[%s1899_s5 + $0x20] sm:$0xff] %vm1338_vm10, %v1326_v20 }
 0x17b   : > { %v1305_v24 = vpop.xlane.xlu1 %1304 }
 0x17c   : > { %v1329_v60 = vadd.f32 %v1305_v24, %v1281_v22 }
 0x17e   : > { %1346 = vst.msk [vmem:[%s1899_s5 + $0x38] sm:$0xff] %vm1338_vm10, %v1329_v60 }
 0x186   : > { %v1303_v5 = vpop.xlane.xlu0 %1302 }
 0x187   : > { %v1328_v14 = vadd.f32 %v1303_v5, %v1280_v25 }
 0x189   : > { %1345 = vst.msk [vmem:[%s1899_s5 + $0x30] sm:$0xff] %vm1338_vm10, %v1328_v14 }
 0x194   : > { %v1309_v28 = vpop.xlane.xlu1 %1308 }
 0x195   : > { %v1331_v19 = vadd.f32 %v1309_v28, %v1283_v26 }
 0x197   : > { %1348 = vst.msk [vmem:[%s1899_s5 + $0x48] sm:$0xff] %vm1338_vm10, %v1331_v19 }
 0x1a0   : > { %v1307_v11 = vpop.xlane.xlu0 %1306 }
 0x1a1   : > { %v1330_v21 = vadd.f32 %v1307_v11, %v1282_v18 }
 0x1a3   : > { %1347 = vst.msk [vmem:[%s1899_s5 + $0x40] sm:$0xff] %vm1338_vm10, %v1330_v21 }
 0x1ab   : > { %v1313_v12 = vpop.xlane.xlu1 %1312 }
 0x1ac   : > { %v1333_v37 = vadd.f32 %v1313_v12, %v1285_v27 }
 0x1ae   : > { %1350 = vst.msk [vmem:[%s1899_s5 + $0x58] sm:$0xff] %vm1338_vm10, %v1333_v37 }
 0x1b7   : > { %v1311_v23 = vpop.xlane.xlu0 %1310 }
 0x1b8   : > { %v1332_v13 = vadd.f32 %v1311_v23, %v1284_v40 }
 0x1ba   : > { %1349 = vst.msk [vmem:[%s1899_s5 + $0x50] sm:$0xff] %vm1338_vm10, %v1332_v13 }
 0x1c4   : > { %v1317_v44 = vpop.xlane.xlu1 %1316 }
 0x1c5   : > { %v1335_v38 = vadd.f32 %v1317_v44, %v1287_v43 }
 0x1c7   : > { %1352 = vst.msk [vmem:[%s1899_s5 + $0x68] sm:$0xff] %vm1338_vm10, %v1335_v38 }
 0x1cf   : > { %v1315_v0 = vpop.xlane.xlu0 %1314 }
 0x1d0   : > { %v1334_v16 = vadd.f32 %v1315_v0, %v1286_v39 }
 0x1d2   : > { %1351 = vst.msk [vmem:[%s1899_s5 + $0x60] sm:$0xff] %vm1338_vm10, %v1334_v16 }
 0x1da   : > { %v1321_v41 = vpop.xlane.xlu1 %1320 }
 0x1db   : > { %v1337_v48 = vadd.f32 %v1321_v41, %v1289_v30 }
 0x1dd   : > { %1354 = vst.msk [vmem:[%s1899_s5 + $0x78] sm:$0xff] %vm1338_vm10, %v1337_v48 }
 0x1e6   : > { %v1319_v62 = vpop.xlane.xlu0 %1318 }
 0x1e7   : > { %v1336_v42 = vadd.f32 %v1319_v62, %v1288_v9 }
 0x1e9   : > { %1353 = vst.msk [vmem:[%s1899_s5 + $0x70] sm:$0xff] %vm1338_vm10, %v1336_v42 }
 0x1ea PF: > { %p25_p13 = scmp.ge.s32.totalorder %s1770_s7, 4   ;;  %s3177_s0 = smov %s1693_s1 }
 0x1eb   : > { %s3178_s1 = smov %s1697_s30  ;;  %s3179_s30 = smov %s1780_s10 }
 0x1ec   : > { %s3180_s5 = smov %s1770_s7  ;;  %27 = sbr.rel (!%p25_p13) target bundleno = 27 (0x1b), region = 119 }
 0x1f3   :  { %1380 = vsyncpa [#allocation6], 1 }
 0x1f4   :  { %1382 = vsyncpa [#allocation6 + $0x1], 1 }
 0x1f5   :  { %1383 = vsyncpa [#allocation8], 1 }
 0x1f6   :  { %1385 = vsyncpa [#allocation8 + $0x1], 1 }

</bundles_post_ra>
